<compile_context>
chip_gen: v7x
topology: tpu7x:2x2x1
jax: 0.10.0
libtpu: 0.0.40
codegen_flags: <defaults>
</compile_context>

<pallas_src>
import jax
import jax.numpy as jnp
from jax import lax
from jax.experimental import pallas as pl
from jax.experimental.pallas import tpu as pltpu

EPS = 1e-5                       # nn.BatchNorm2d default eps
_VMEM_LIMIT = 32 * 1024 * 1024   # explicit scoped-VMEM budget (safe on v5e/v6e/v7x)


# ------------------------------ Pallas kernels -------------------------------

def _make_conv_kernel(taps, cg, s_out, apply_relu, with_stats, with_mask):
    """Multi-tap shifted-view convolution on one image.

    Block shapes seen by the kernel:
      x_ref    : (1, Cin_total, S_in)  flat zero-padded activation (+ overhang)
      w_ref    : (T, Cout, Cg)         per-tap weight slices
      b_ref    : (Cout, 1)             bias, added in f32 after the matmuls
      mask_ref : (1, S_out)            1.0 at valid pixels (optional)
      y_ref    : (1, Cout, S_out)      conv output (f32)
      sum/ssq  : (1, Cout, 1)          per-image BatchNorm partial stats
    Each tap t = (channel_offset, lane_offset) selects a shifted view of the
    input directly in VMEM (no HBM im2col) and contributes one
    (Cout, Cg) @ (Cg, S_out) MXU dot accumulated in f32.
    """
    def kernel(x_ref, w_ref, b_ref, *rest):
        ridx = 0
        mask_ref = None
        if with_mask:
            mask_ref = rest[ridx]
            ridx += 1
        y_ref = rest[ridx]
        ridx += 1

        acc = None
        for t, (c0, d) in enumerate(taps):
            xs = x_ref[0, c0:c0 + cg, d:d + s_out]          # static VMEM slice
            part = jnp.dot(w_ref[t], xs, preferred_element_type=jnp.float32)
            acc = part if acc is None else acc + part
        y = acc + b_ref[...]
        if apply_relu:
            y = jnp.maximum(y, 0.0)
        if with_mask:
            y = y * mask_ref[...]        # zero out the padded-border outputs
        y_ref[0] = y.astype(y_ref.dtype)

        if with_stats:
            sum_ref = rest[ridx]
            ssq_ref = rest[ridx + 1]
            sum_ref[0] = jnp.sum(y, axis=1, keepdims=True)
            ssq_ref[0] = jnp.sum(y * y, axis=1, keepdims=True)
    return kernel


def conv_taps_pallas(x, w, b, mask, *, taps, cg, s_out, apply_relu, with_stats):
    """Per-image multi-tap conv.  Grid = (N,), every axis 'parallel'.

    TODO(synk): per-image blocks assume one padded image fits VMEM; tile rows
    (with a kh-1 halo) inside the grid for larger feature maps.
    """
    n, cin_tot, s_in = x.shape
    tcnt, cout, _ = w.shape

    in_specs = [pl.BlockSpec((1, cin_tot, s_in), lambda i: (i, 0, 0)),
                pl.BlockSpec((tcnt, cout, cg), lambda i: (0, 0, 0)),
                pl.BlockSpec((cout, 1), lambda i: (0, 0))]
    operands = [x, w, b.reshape(cout, 1)]
    if mask is not None:
        in_specs.append(pl.BlockSpec((1, s_out), lambda i: (0, 0)))
        operands.append(mask)

    out_shape = [jax.ShapeDtypeStruct((n, cout, s_out), jnp.float32)]
    out_specs = [pl.BlockSpec((1, cout, s_out), lambda i: (i, 0, 0))]
    if with_stats:
        out_shape += [jax.ShapeDtypeStruct((n, cout, 1), jnp.float32)] * 2
        out_specs += [pl.BlockSpec((1, cout, 1), lambda i: (i, 0, 0))] * 2

    res = pl.pallas_call(
        _make_conv_kernel(taps, cg, s_out, apply_relu, with_stats,
                          mask is not None),
        grid=(n,),
        in_specs=in_specs,
        out_specs=out_specs,
        out_shape=out_shape,
        compiler_params=pltpu.CompilerParams(
            dimension_semantics=("parallel",),
            vmem_limit_bytes=_VMEM_LIMIT),
    )(*operands)
    if with_stats:
        return res[0], res[1], res[2]
    return res[0]


def _make_bn_kernel(ov, s):
    """Training-mode BatchNorm apply as one fused multiply-add + mask.

    h = (y * a + b) * mask, with a = gamma*rsqrt(var+eps) per channel and
    b = beta (+ relu(Linear(t))) - mean*a per image/channel precomputed in XLA.
    The mask restores exact zeros on the padded border; when ov > 0 the output
    is written in the lane-overhang layout the next conv kernel consumes.

    TODO(synk): this apply could be folded into the consumer conv's tap build
    to drop one more activation read+write (needs in-kernel border handling).
    """
    def kernel(y_ref, a_ref, b_ref, mask_ref, o_ref):
        h = (y_ref[0] * a_ref[...] + b_ref[0]) * mask_ref[...]
        h = h.astype(o_ref.dtype)
        if ov:
            o_ref[...] = jnp.zeros(o_ref.shape, o_ref.dtype)
            o_ref[0, :, ov:ov + s] = h
        else:
            o_ref[0] = h
    return kernel


def bn_apply_pallas(y, a_c, bias_nc, mask, *, ov, out_dtype):
    n, c, s = y.shape
    sx = s + 2 * ov
    return pl.pallas_call(
        _make_bn_kernel(ov, s),
        grid=(n,),
        in_specs=[pl.BlockSpec((1, c, s), lambda i: (i, 0, 0)),
                  pl.BlockSpec((c, 1), lambda i: (0, 0)),
                  pl.BlockSpec((1, c, 1), lambda i: (i, 0, 0)),
                  pl.BlockSpec((1, s), lambda i: (0, 0))],
        out_specs=pl.BlockSpec((1, c, sx), lambda i: (i, 0, 0)),
        out_shape=jax.ShapeDtypeStruct((n, c, sx), out_dtype),
        compiler_params=pltpu.CompilerParams(
            dimension_semantics=("parallel",),
            vmem_limit_bytes=_VMEM_LIMIT),
    )(y, a_c.reshape(c, 1), bias_nc.reshape(n, c, 1), mask)


# ------------------------------- glue helpers --------------------------------

def conv_weight_to_taps(w_oihw):
    """PyTorch OIHW conv weight -> (kh*kw, Cout, Cin); tap index = ky*kw + kx."""
    cout, cin, kh, kw = w_oihw.shape
    return jnp.transpose(w_oihw, (2, 3, 0, 1)).reshape(kh * kw, cout, cin)


def _batch_stats(psum, pssq, count):
    s = jnp.sum(psum[:, :, 0], axis=0)
    ss = jnp.sum(pssq[:, :, 0], axis=0)
    mean = s / count
    var = jnp.maximum(ss / count - mean * mean, 0.0)   # clamp: cancellation safety
    return mean, var


def downblock_forward(params, x_nchw, t=None, *, matmul_dtype=jnp.bfloat16):
    n, cin, h, w = x_nchw.shape
    cout = params["gamma1"].shape[0]
    hp, wp = h + 2, w + 2                 # spatial pad = 1 for both 3x3 convs
    s = hp * wp
    ov = ((wp + 1 + 127) // 128) * 128    # 128-aligned lane overhang >= wp+1
    count = n * h * w
    md = matmul_dtype

    w1 = params["w1"].astype(md)
    w2 = params["w2"].astype(md)
    wt = params["wt"].astype(md)

    # Valid-pixel mask over the flat padded (hp, wp) grid.
    rows = (jnp.arange(hp) >= 1) & (jnp.arange(hp) <= h)
    cols = (jnp.arange(wp) >= 1) & (jnp.arange(wp) <= w)
    mask = (rows[:, None] & cols[None, :]).astype(jnp.float32).reshape(1, s)

    # Input prep: NCHW -> zero-padded flat (N, Cin, S + 2*ov), matmul dtype.
    xp = jnp.pad(x_nchw, ((0, 0), (0, 0), (1, 1), (1, 1))).reshape(n, cin, s)
    x_ext = jnp.pad(xp, ((0, 0), (0, 0), (ov, ov))).astype(md)

    # 3x3 taps: output pixel p reads input column ov + p + (ky-1)*wp + (kx-1).
    taps33 = [(0, ov - (wp + 1) + ky * wp + kx)
              for ky in range(3) for kx in range(3)]

    # ---- conv1 (3x3, pad 1) + ReLU, BN1 per-image partial stats fused -------
    y1, ps1, pss1 = conv_taps_pallas(x_ext, w1, params["b1"], mask,
                                     taps=taps33, cg=cin, s_out=s,
                                     apply_relu=True, with_stats=True)
    mean1, var1 = _batch_stats(ps1, pss1, count)
    a1 = params["gamma1"] * lax.rsqrt(var1 + EPS)
    if t is not None:
        te = jax.nn.relu(jnp.dot(t, params["wl"].T,
                                 precision=lax.Precision.HIGHEST) + params["bl"])
        shift1 = params["beta1"][None, :] + te                      # (N, Cout)
    else:
        shift1 = jnp.broadcast_to(params["beta1"][None, :], (n, cout))
    bias1 = shift1 - mean1[None, :] * a1[None, :]
    h1 = bn_apply_pallas(y1, a1, bias1, mask, ov=ov, out_dtype=md)   # (N,C,S+2ov)

    # ---- conv2 (3x3, pad 1) + ReLU + BN2 partial stats -----------------------
    y2, ps2, pss2 = conv_taps_pallas(h1, w2, params["b2"], mask,
                                     taps=taps33, cg=cout, s_out=s,
                                     apply_relu=True, with_stats=True)
    mean2, var2 = _batch_stats(ps2, pss2, count)
    a2 = params["gamma2"] * lax.rsqrt(var2 + EPS)
    bias2 = (jnp.broadcast_to(params["beta2"][None, :], (n, cout))
             - mean2[None, :] * a2[None, :])
    h2 = bn_apply_pallas(y2, a2, bias2, mask, ov=0, out_dtype=md)    # (N,C,S)

    # ---- transform: Conv2d(C, C, 4, stride 2, pad 1) -------------------------
    # Space-to-depth: stride-2 4x4 conv == 16 stride-1 taps over the 4 phase
    # planes stacked on the channel axis (one activation-sized XLA shuffle).
    hq, wq = hp // 2, wp // 2
    sq = hq * wq
    ovq = wq + 1
    h2_sp = h2.reshape(n, cout, hp, wp)
    phases = [h2_sp[:, :, py::2, px::2] for py in range(2) for px in range(2)]
    h2_ph = jnp.concatenate(phases, axis=1).reshape(n, 4 * cout, sq)
    h2_ph = jnp.pad(h2_ph, ((0, 0), (0, 0), (0, ovq)))
    taps44 = [((2 * (ky % 2) + (kx % 2)) * cout, (ky // 2) * wq + (kx // 2))
              for ky in range(4) for kx in range(4)]
    y3 = conv_taps_pallas(h2_ph, wt, params["bt"], None,
                          taps=taps44, cg=cout, s_out=sq,
                          apply_relu=False, with_stats=False)        # (N,C,Sq)
    ho, wo = h // 2, w // 2
    return y3.reshape(n, cout, hq, wq)[:, :, :ho, :wo]               # NCHW


# ------------------------- pure-JAX reference (check) -------------------------

def reference_forward(raw, x, t, op_dtype):
    """PyTorch-semantics reference; conv operands rounded to `op_dtype` so the
    comparison against the bf16-operand / f32-accumulate kernel is exact up to
    summation order."""
    hp = lax.Precision.HIGHEST
    cast = lambda a: a.astype(op_dtype).astype(jnp.float32)

    def conv(v, w, b, stride, pad):
        y = lax.conv_general_dilated(
            cast(v), cast(w), (stride, stride), [(pad, pad), (pad, pad)],
            dimension_numbers=("NCHW", "OIHW", "NCHW"), precision=hp)
        return y + b[None, :, None, None]

    def bn(v, g, be):
        m = v.mean(axis=(0, 2, 3), keepdims=True)
        var = jnp.square(v - m).mean(axis=(0, 2, 3), keepdims=True)
        return ((v - m) * lax.rsqrt(var + EPS) * g[None, :, None, None]
                + be[None, :, None, None])

    h = bn(jax.nn.relu(conv(x, raw["w1"], raw["b1"], 1, 1)), raw["g1"], raw["be1"])
    te = jax.nn.relu(jnp.dot(t, raw["wl"].T, precision=hp) + raw["bl"])
    h = h + te[:, :, None, None]
    h = bn(jax.nn.relu(conv(h, raw["w2"], raw["b2"], 1, 1)), raw["g2"], raw["be2"])
    return conv(h, raw["wt"], raw["bt"], 2, 1)


# ------------------------------------ main ------------------------------------

if __name__ == "__main__":
    in_ch, out_ch, time_emb_dim = 4, 8, 32
    n, h, w = 2, 16, 16

    key = jax.random.PRNGKey(0)
    ks = jax.random.split(key, 14)
    raw = {
        "w1": 0.1 * jax.random.normal(ks[0], (out_ch, in_ch, 3, 3), jnp.float32),
        "b1": 0.1 * jax.random.normal(ks[1], (out_ch,), jnp.float32),
        "w2": 0.1 * jax.random.normal(ks[2], (out_ch, out_ch, 3, 3), jnp.float32),
        "b2": 0.1 * jax.random.normal(ks[3], (out_ch,), jnp.float32),
        "wt": 0.1 * jax.random.normal(ks[4], (out_ch, out_ch, 4, 4), jnp.float32),
        "bt": 0.1 * jax.random.normal(ks[5], (out_ch,), jnp.float32),
        "wl": 0.1 * jax.random.normal(ks[6], (out_ch, time_emb_dim), jnp.float32),
        "bl": 0.1 * jax.random.normal(ks[7], (out_ch,), jnp.float32),
        "g1": 1.0 + 0.1 * jax.random.normal(ks[8], (out_ch,), jnp.float32),
        "be1": 0.1 * jax.random.normal(ks[9], (out_ch,), jnp.float32),
        "g2": 1.0 + 0.1 * jax.random.normal(ks[10], (out_ch,), jnp.float32),
        "be2": 0.1 * jax.random.normal(ks[11], (out_ch,), jnp.float32),
    }
    params = {
        "w1": conv_weight_to_taps(raw["w1"]), "b1": raw["b1"],
        "w2": conv_weight_to_taps(raw["w2"]), "b2": raw["b2"],
        "wt": conv_weight_to_taps(raw["wt"]), "bt": raw["bt"],
        "wl": raw["wl"], "bl": raw["bl"],
        "gamma1": raw["g1"], "beta1": raw["be1"],
        "gamma2": raw["g2"], "beta2": raw["be2"],
    }

    x = jax.random.normal(ks[12], (n, in_ch, h, w), jnp.float32)     # NCHW
    t = jax.random.normal(ks[13], (n, time_emb_dim), jnp.float32)

    fwd = jax.jit(lambda p, xx, tt: downblock_forward(
        p, xx, tt, matmul_dtype=jnp.bfloat16))
    out = jax.block_until_ready(fwd(params, x, t))

    ref = reference_forward(raw, x, t, jnp.bfloat16)
    assert out.shape == (n, out_ch, h // 2, w // 2), out.shape
    err = float(jnp.max(jnp.abs(out - ref)))
    assert bool(jnp.all(jnp.isfinite(out))), "non-finite output"
    assert bool(jnp.allclose(out, ref, atol=1e-2, rtol=1e-2)), f"max abs diff {err}"
    print("KERNEL_OK")
</pallas_src>

<mosaic_0001>
module attributes {stable_mosaic.version = 11 : i64} {
  func.func @kernel(%arg0: i32, %arg1: memref<1x4x580xbf16, #tpu.memory_space<vmem>>, %arg2: memref<9x8x4xbf16, #tpu.memory_space<vmem>>, %arg3: memref<8x1xf32, #tpu.memory_space<vmem>>, %arg4: memref<1x324xf32, #tpu.memory_space<vmem>>, %arg5: memref<1x8x324xf32, #tpu.memory_space<vmem>>, %arg6: memref<1x8x1xf32, #tpu.memory_space<vmem>>, %arg7: memref<1x8x1xf32, #tpu.memory_space<vmem>>) attributes {dimension_semantics = [#tpu.dimension_semantics<parallel>], iteration_bounds = array<i64: 2>, scalar_prefetch = 0 : i64, scratch_operands = 0 : i64, tpu.core_type = #tpu.core_type<tc>, window_params = [{transform_indices = @transform_0, window_bounds = array<i64: 1, 4, 580>}, {pipeline_mode = #tpu.pipeline_mode<synchronous>, transform_indices = @transform_1, window_bounds = array<i64: 9, 8, 4>}, {pipeline_mode = #tpu.pipeline_mode<synchronous>, transform_indices = @transform_2, window_bounds = array<i64: 8, 1>}, {pipeline_mode = #tpu.pipeline_mode<synchronous>, transform_indices = @transform_3, window_bounds = array<i64: 1, 324>}, {transform_indices = @transform_4, window_bounds = array<i64: 1, 8, 324>}, {transform_indices = @transform_5, window_bounds = array<i64: 1, 8, 1>}, {transform_indices = @transform_6, window_bounds = array<i64: 1, 8, 1>}]} {
    %c0 = arith.constant 0 : index
    %c0_0 = arith.constant 0 : index
    %c109 = arith.constant 109 : index
    %0 = vector.load %arg1[%c0, %c0_0, %c109] : memref<1x4x580xbf16, #tpu.memory_space<vmem>>, vector<1x4x324xbf16>
    %1 = vector.shape_cast %0 : vector<1x4x324xbf16> to vector<4x324xbf16>
    %c0_1 = arith.constant 0 : index
    %c0_2 = arith.constant 0 : index
    %c0_3 = arith.constant 0 : index
    %2 = vector.load %arg2[%c0_1, %c0_2, %c0_3] : memref<9x8x4xbf16, #tpu.memory_space<vmem>>, vector<1x8x4xbf16>
    %3 = vector.shape_cast %2 : vector<1x8x4xbf16> to vector<8x4xbf16>
    %cst = arith.constant dense<0.000000e+00> : vector<8x324xf32>
    %4 = tpu.matmul %3, %1, %cst {dimension_numbers = #tpu.dot_dimension_numbers<[1], [0], [0], [1], [0, 0, 1, 1], [], []>} : vector<8x4xbf16>, vector<4x324xbf16>, vector<8x324xf32> -> vector<8x324xf32>
    %c0_4 = arith.constant 0 : index
    %c0_5 = arith.constant 0 : index
    %c110 = arith.constant 110 : index
    %5 = vector.load %arg1[%c0_4, %c0_5, %c110] : memref<1x4x580xbf16, #tpu.memory_space<vmem>>, vector<1x4x324xbf16>
    %6 = vector.shape_cast %5 : vector<1x4x324xbf16> to vector<4x324xbf16>
    %c1 = arith.constant 1 : index
    %c0_6 = arith.constant 0 : index
    %c0_7 = arith.constant 0 : index
    %7 = vector.load %arg2[%c1, %c0_6, %c0_7] : memref<9x8x4xbf16, #tpu.memory_space<vmem>>, vector<1x8x4xbf16>
    %8 = vector.shape_cast %7 : vector<1x8x4xbf16> to vector<8x4xbf16>
    %cst_8 = arith.constant dense<0.000000e+00> : vector<8x324xf32>
    %9 = tpu.matmul %8, %6, %cst_8 {dimension_numbers = #tpu.dot_dimension_numbers<[1], [0], [0], [1], [0, 0, 1, 1], [], []>} : vector<8x4xbf16>, vector<4x324xbf16>, vector<8x324xf32> -> vector<8x324xf32>
    %10 = arith.addf %4, %9 : vector<8x324xf32>
    %c0_9 = arith.constant 0 : index
    %c0_10 = arith.constant 0 : index
    %c111 = arith.constant 111 : index
    %11 = vector.load %arg1[%c0_9, %c0_10, %c111] : memref<1x4x580xbf16, #tpu.memory_space<vmem>>, vector<1x4x324xbf16>
    %12 = vector.shape_cast %11 : vector<1x4x324xbf16> to vector<4x324xbf16>
    %c2 = arith.constant 2 : index
    %c0_11 = arith.constant 0 : index
    %c0_12 = arith.constant 0 : index
    %13 = vector.load %arg2[%c2, %c0_11, %c0_12] : memref<9x8x4xbf16, #tpu.memory_space<vmem>>, vector<1x8x4xbf16>
    %14 = vector.shape_cast %13 : vector<1x8x4xbf16> to vector<8x4xbf16>
    %cst_13 = arith.constant dense<0.000000e+00> : vector<8x324xf32>
    %15 = tpu.matmul %14, %12, %cst_13 {dimension_numbers = #tpu.dot_dimension_numbers<[1], [0], [0], [1], [0, 0, 1, 1], [], []>} : vector<8x4xbf16>, vector<4x324xbf16>, vector<8x324xf32> -> vector<8x324xf32>
    %16 = arith.addf %10, %15 : vector<8x324xf32>
    %c0_14 = arith.constant 0 : index
    %c0_15 = arith.constant 0 : index
    %c127 = arith.constant 127 : index
    %17 = vector.load %arg1[%c0_14, %c0_15, %c127] : memref<1x4x580xbf16, #tpu.memory_space<vmem>>, vector<1x4x324xbf16>
    %18 = vector.shape_cast %17 : vector<1x4x324xbf16> to vector<4x324xbf16>
    %c3 = arith.constant 3 : index
    %c0_16 = arith.constant 0 : index
    %c0_17 = arith.constant 0 : index
    %19 = vector.load %arg2[%c3, %c0_16, %c0_17] : memref<9x8x4xbf16, #tpu.memory_space<vmem>>, vector<1x8x4xbf16>
    %20 = vector.shape_cast %19 : vector<1x8x4xbf16> to vector<8x4xbf16>
    %cst_18 = arith.constant dense<0.000000e+00> : vector<8x324xf32>
    %21 = tpu.matmul %20, %18, %cst_18 {dimension_numbers = #tpu.dot_dimension_numbers<[1], [0], [0], [1], [0, 0, 1, 1], [], []>} : vector<8x4xbf16>, vector<4x324xbf16>, vector<8x324xf32> -> vector<8x324xf32>
    %22 = arith.addf %16, %21 : vector<8x324xf32>
    %c0_19 = arith.constant 0 : index
    %c0_20 = arith.constant 0 : index
    %c128 = arith.constant 128 : index
    %23 = vector.load %arg1[%c0_19, %c0_20, %c128] : memref<1x4x580xbf16, #tpu.memory_space<vmem>>, vector<1x4x324xbf16>
    %24 = vector.shape_cast %23 : vector<1x4x324xbf16> to vector<4x324xbf16>
    %c4 = arith.constant 4 : index
    %c0_21 = arith.constant 0 : index
    %c0_22 = arith.constant 0 : index
    %25 = vector.load %arg2[%c4, %c0_21, %c0_22] : memref<9x8x4xbf16, #tpu.memory_space<vmem>>, vector<1x8x4xbf16>
    %26 = vector.shape_cast %25 : vector<1x8x4xbf16> to vector<8x4xbf16>
    %cst_23 = arith.constant dense<0.000000e+00> : vector<8x324xf32>
    %27 = tpu.matmul %26, %24, %cst_23 {dimension_numbers = #tpu.dot_dimension_numbers<[1], [0], [0], [1], [0, 0, 1, 1], [], []>} : vector<8x4xbf16>, vector<4x324xbf16>, vector<8x324xf32> -> vector<8x324xf32>
    %28 = arith.addf %22, %27 : vector<8x324xf32>
    %c0_24 = arith.constant 0 : index
    %c0_25 = arith.constant 0 : index
    %c129 = arith.constant 129 : index
    %29 = vector.load %arg1[%c0_24, %c0_25, %c129] : memref<1x4x580xbf16, #tpu.memory_space<vmem>>, vector<1x4x324xbf16>
    %30 = vector.shape_cast %29 : vector<1x4x324xbf16> to vector<4x324xbf16>
    %c5 = arith.constant 5 : index
    %c0_26 = arith.constant 0 : index
    %c0_27 = arith.constant 0 : index
    %31 = vector.load %arg2[%c5, %c0_26, %c0_27] : memref<9x8x4xbf16, #tpu.memory_space<vmem>>, vector<1x8x4xbf16>
    %32 = vector.shape_cast %31 : vector<1x8x4xbf16> to vector<8x4xbf16>
    %cst_28 = arith.constant dense<0.000000e+00> : vector<8x324xf32>
    %33 = tpu.matmul %32, %30, %cst_28 {dimension_numbers = #tpu.dot_dimension_numbers<[1], [0], [0], [1], [0, 0, 1, 1], [], []>} : vector<8x4xbf16>, vector<4x324xbf16>, vector<8x324xf32> -> vector<8x324xf32>
    %34 = arith.addf %28, %33 : vector<8x324xf32>
    %c0_29 = arith.constant 0 : index
    %c0_30 = arith.constant 0 : index
    %c145 = arith.constant 145 : index
    %35 = vector.load %arg1[%c0_29, %c0_30, %c145] : memref<1x4x580xbf16, #tpu.memory_space<vmem>>, vector<1x4x324xbf16>
    %36 = vector.shape_cast %35 : vector<1x4x324xbf16> to vector<4x324xbf16>
    %c6 = arith.constant 6 : index
    %c0_31 = arith.constant 0 : index
    %c0_32 = arith.constant 0 : index
    %37 = vector.load %arg2[%c6, %c0_31, %c0_32] : memref<9x8x4xbf16, #tpu.memory_space<vmem>>, vector<1x8x4xbf16>
    %38 = vector.shape_cast %37 : vector<1x8x4xbf16> to vector<8x4xbf16>
    %cst_33 = arith.constant dense<0.000000e+00> : vector<8x324xf32>
    %39 = tpu.matmul %38, %36, %cst_33 {dimension_numbers = #tpu.dot_dimension_numbers<[1], [0], [0], [1], [0, 0, 1, 1], [], []>} : vector<8x4xbf16>, vector<4x324xbf16>, vector<8x324xf32> -> vector<8x324xf32>
    %40 = arith.addf %34, %39 : vector<8x324xf32>
    %c0_34 = arith.constant 0 : index
    %c0_35 = arith.constant 0 : index
    %c146 = arith.constant 146 : index
    %41 = vector.load %arg1[%c0_34, %c0_35, %c146] : memref<1x4x580xbf16, #tpu.memory_space<vmem>>, vector<1x4x324xbf16>
    %42 = vector.shape_cast %41 : vector<1x4x324xbf16> to vector<4x324xbf16>
    %c7 = arith.constant 7 : index
    %c0_36 = arith.constant 0 : index
    %c0_37 = arith.constant 0 : index
    %43 = vector.load %arg2[%c7, %c0_36, %c0_37] : memref<9x8x4xbf16, #tpu.memory_space<vmem>>, vector<1x8x4xbf16>
    %44 = vector.shape_cast %43 : vector<1x8x4xbf16> to vector<8x4xbf16>
    %cst_38 = arith.constant dense<0.000000e+00> : vector<8x324xf32>
    %45 = tpu.matmul %44, %42, %cst_38 {dimension_numbers = #tpu.dot_dimension_numbers<[1], [0], [0], [1], [0, 0, 1, 1], [], []>} : vector<8x4xbf16>, vector<4x324xbf16>, vector<8x324xf32> -> vector<8x324xf32>
    %46 = arith.addf %40, %45 : vector<8x324xf32>
    %c0_39 = arith.constant 0 : index
    %c0_40 = arith.constant 0 : index
    %c147 = arith.constant 147 : index
    %47 = vector.load %arg1[%c0_39, %c0_40, %c147] : memref<1x4x580xbf16, #tpu.memory_space<vmem>>, vector<1x4x324xbf16>
    %48 = vector.shape_cast %47 : vector<1x4x324xbf16> to vector<4x324xbf16>
    %c8 = arith.constant 8 : index
    %c0_41 = arith.constant 0 : index
    %c0_42 = arith.constant 0 : index
    %49 = vector.load %arg2[%c8, %c0_41, %c0_42] : memref<9x8x4xbf16, #tpu.memory_space<vmem>>, vector<1x8x4xbf16>
    %50 = vector.shape_cast %49 : vector<1x8x4xbf16> to vector<8x4xbf16>
    %cst_43 = arith.constant dense<0.000000e+00> : vector<8x324xf32>
    %51 = tpu.matmul %50, %48, %cst_43 {dimension_numbers = #tpu.dot_dimension_numbers<[1], [0], [0], [1], [0, 0, 1, 1], [], []>} : vector<8x4xbf16>, vector<4x324xbf16>, vector<8x324xf32> -> vector<8x324xf32>
    %52 = arith.addf %46, %51 : vector<8x324xf32>
    %c0_44 = arith.constant 0 : index
    %c0_45 = arith.constant 0 : index
    %53 = vector.load %arg3[%c0_44, %c0_45] : memref<8x1xf32, #tpu.memory_space<vmem>>, vector<8x1xf32>
    %54 = vector.broadcast %53 : vector<8x1xf32> to vector<8x324xf32>
    %55 = arith.addf %52, %54 : vector<8x324xf32>
    %cst_46 = arith.constant 0.000000e+00 : f32
    %56 = vector.broadcast %cst_46 : f32 to vector<8x324xf32>
    %57 = arith.maximumf %55, %56 : vector<8x324xf32>
    %c0_47 = arith.constant 0 : index
    %c0_48 = arith.constant 0 : index
    %58 = vector.load %arg4[%c0_47, %c0_48] : memref<1x324xf32, #tpu.memory_space<vmem>>, vector<1x324xf32>
    %59 = vector.broadcast %58 : vector<1x324xf32> to vector<8x324xf32>
    %60 = arith.mulf %57, %59 : vector<8x324xf32>
    %c0_49 = arith.constant 0 : index
    %c0_50 = arith.constant 0 : index
    %c0_51 = arith.constant 0 : index
    %61 = vector.load %arg5[%c0_49, %c0_50, %c0_51] : memref<1x8x324xf32, #tpu.memory_space<vmem>>, vector<1x8x324xf32>
    %62 = vector.shape_cast %61 : vector<1x8x324xf32> to vector<8x324xf32>
    %63 = vector.shape_cast %60 : vector<8x324xf32> to vector<1x8x324xf32>
    tpu.vector_store %arg5[%c0_49, %c0_50, %c0_51], %63 {strides = array<i32>} : memref<1x8x324xf32, #tpu.memory_space<vmem>>, vector<1x8x324xf32>,
    %cst_52 = arith.constant dense<0.000000e+00> : vector<8xf32>
    %64 = vector.multi_reduction <add>, %60, %cst_52 [1] : vector<8x324xf32> to vector<8xf32>
    %65 = vector.shape_cast %64 : vector<8xf32> to vector<8x1xf32>
    %c0_53 = arith.constant 0 : index
    %c0_54 = arith.constant 0 : index
    %c0_55 = arith.constant 0 : index
    %66 = vector.load %arg6[%c0_53, %c0_54, %c0_55] : memref<1x8x1xf32, #tpu.memory_space<vmem>>, vector<1x8x1xf32>
    %67 = vector.shape_cast %66 : vector<1x8x1xf32> to vector<8x1xf32>
    %68 = vector.shape_cast %65 : vector<8x1xf32> to vector<1x8x1xf32>
    tpu.vector_store %arg6[%c0_53, %c0_54, %c0_55], %68 {strides = array<i32>} : memref<1x8x1xf32, #tpu.memory_space<vmem>>, vector<1x8x1xf32>,
    %69 = arith.mulf %60, %60 : vector<8x324xf32>
    %cst_56 = arith.constant dense<0.000000e+00> : vector<8xf32>
    %70 = vector.multi_reduction <add>, %69, %cst_56 [1] : vector<8x324xf32> to vector<8xf32>
    %71 = vector.shape_cast %70 : vector<8xf32> to vector<8x1xf32>
    %c0_57 = arith.constant 0 : index
    %c0_58 = arith.constant 0 : index
    %c0_59 = arith.constant 0 : index
    %72 = vector.load %arg7[%c0_57, %c0_58, %c0_59] : memref<1x8x1xf32, #tpu.memory_space<vmem>>, vector<1x8x1xf32>
    %73 = vector.shape_cast %72 : vector<1x8x1xf32> to vector<8x1xf32>
    %74 = vector.shape_cast %71 : vector<8x1xf32> to vector<1x8x1xf32>
    tpu.vector_store %arg7[%c0_57, %c0_58, %c0_59], %74 {strides = array<i32>} : memref<1x8x1xf32, #tpu.memory_space<vmem>>, vector<1x8x1xf32>,
    return
  }
  func.func @transform_0(%arg0: i32) -> (i32, i32, i32) {
    %c0_i32 = arith.constant 0 : i32
    %c0_i32_0 = arith.constant 0 : i32
    %c0_i32_1 = arith.constant 0 : i32
    return %arg0, %c0_i32, %c0_i32_0 : i32, i32, i32
  }
  func.func @transform_1(%arg0: i32) -> (i32, i32, i32) {
    %c0_i32 = arith.constant 0 : i32
    %c0_i32_0 = arith.constant 0 : i32
    %c0_i32_1 = arith.constant 0 : i32
    %c0_i32_2 = arith.constant 0 : i32
    return %c0_i32, %c0_i32_0, %c0_i32_1 : i32, i32, i32
  }
  func.func @transform_2(%arg0: i32) -> (i32, i32) {
    %c0_i32 = arith.constant 0 : i32
    %c0_i32_0 = arith.constant 0 : i32
    %c0_i32_1 = arith.constant 0 : i32
    return %c0_i32, %c0_i32_0 : i32, i32
  }
  func.func @transform_3(%arg0: i32) -> (i32, i32) {
    %c0_i32 = arith.constant 0 : i32
    %c0_i32_0 = arith.constant 0 : i32
    %c0_i32_1 = arith.constant 0 : i32
    return %c0_i32, %c0_i32_0 : i32, i32
  }
  func.func @transform_4(%arg0: i32) -> (i32, i32, i32) {
    %c0_i32 = arith.constant 0 : i32
    %c0_i32_0 = arith.constant 0 : i32
    %c0_i32_1 = arith.constant 0 : i32
    return %arg0, %c0_i32, %c0_i32_0 : i32, i32, i32
  }
  func.func @transform_5(%arg0: i32) -> (i32, i32, i32) {
    %c0_i32 = arith.constant 0 : i32
    %c0_i32_0 = arith.constant 0 : i32
    %c0_i32_1 = arith.constant 0 : i32
    return %arg0, %c0_i32, %c0_i32_0 : i32, i32, i32
  }
  func.func @transform_6(%arg0: i32) -> (i32, i32, i32) {
    %c0_i32 = arith.constant 0 : i32
    %c0_i32_0 = arith.constant 0 : i32
    %c0_i32_1 = arith.constant 0 : i32
    return %arg0, %c0_i32, %c0_i32_0 : i32, i32, i32
  }
}

module attributes {stable_mosaic.version = 11 : i64} {
  func.func @kernel(%arg0: i32, %arg1: memref<1x8x324xf32, #tpu.memory_space<vmem>>, %arg2: memref<8x1xf32, #tpu.memory_space<vmem>>, %arg3: memref<1x8x1xf32, #tpu.memory_space<vmem>>, %arg4: memref<1x324xf32, #tpu.memory_space<vmem>>, %arg5: memref<1x8x580xbf16, #tpu.memory_space<vmem>>) attributes {dimension_semantics = [#tpu.dimension_semantics<parallel>], iteration_bounds = array<i64: 2>, scalar_prefetch = 0 : i64, scratch_operands = 0 : i64, tpu.core_type = #tpu.core_type<tc>, window_params = [{transform_indices = @transform_0, window_bounds = array<i64: 1, 8, 324>}, {pipeline_mode = #tpu.pipeline_mode<synchronous>, transform_indices = @transform_1, window_bounds = array<i64: 8, 1>}, {transform_indices = @transform_2, window_bounds = array<i64: 1, 8, 1>}, {pipeline_mode = #tpu.pipeline_mode<synchronous>, transform_indices = @transform_3, window_bounds = array<i64: 1, 324>}, {transform_indices = @transform_4, window_bounds = array<i64: 1, 8, 580>}]} {
    %c0 = arith.constant 0 : index
    %c0_0 = arith.constant 0 : index
    %c0_1 = arith.constant 0 : index
    %0 = vector.load %arg1[%c0, %c0_0, %c0_1] : memref<1x8x324xf32, #tpu.memory_space<vmem>>, vector<1x8x324xf32>
    %1 = vector.shape_cast %0 : vector<1x8x324xf32> to vector<8x324xf32>
    %c0_2 = arith.constant 0 : index
    %c0_3 = arith.constant 0 : index
    %2 = vector.load %arg2[%c0_2, %c0_3] : memref<8x1xf32, #tpu.memory_space<vmem>>, vector<8x1xf32>
    %3 = vector.broadcast %2 : vector<8x1xf32> to vector<8x324xf32>
    %4 = arith.mulf %1, %3 : vector<8x324xf32>
    %c0_4 = arith.constant 0 : index
    %c0_5 = arith.constant 0 : index
    %c0_6 = arith.constant 0 : index
    %5 = vector.load %arg3[%c0_4, %c0_5, %c0_6] : memref<1x8x1xf32, #tpu.memory_space<vmem>>, vector<1x8x1xf32>
    %6 = vector.shape_cast %5 : vector<1x8x1xf32> to vector<8x1xf32>
    %7 = vector.broadcast %6 : vector<8x1xf32> to vector<8x324xf32>
    %8 = arith.addf %4, %7 : vector<8x324xf32>
    %c0_7 = arith.constant 0 : index
    %c0_8 = arith.constant 0 : index
    %9 = vector.load %arg4[%c0_7, %c0_8] : memref<1x324xf32, #tpu.memory_space<vmem>>, vector<1x324xf32>
    %10 = vector.broadcast %9 : vector<1x324xf32> to vector<8x324xf32>
    %11 = arith.mulf %8, %10 : vector<8x324xf32>
    %12 = arith.truncf %11 : vector<8x324xf32> to vector<8x324xbf16>
    %cst = arith.constant 0.000000e+00 : bf16
    %13 = vector.broadcast %cst : bf16 to vector<1x8x580xbf16>
    %c0_9 = arith.constant 0 : index
    %c0_10 = arith.constant 0 : index
    %c0_11 = arith.constant 0 : index
    %14 = vector.load %arg5[%c0_9, %c0_10, %c0_11] : memref<1x8x580xbf16, #tpu.memory_space<vmem>>, vector<1x8x580xbf16>
    tpu.vector_store %arg5[%c0_9, %c0_10, %c0_11], %13 {strides = array<i32>} : memref<1x8x580xbf16, #tpu.memory_space<vmem>>, vector<1x8x580xbf16>,
    %c0_12 = arith.constant 0 : index
    %c0_13 = arith.constant 0 : index
    %c128 = arith.constant 128 : index
    %15 = vector.load %arg5[%c0_12, %c0_13, %c128] : memref<1x8x580xbf16, #tpu.memory_space<vmem>>, vector<1x8x324xbf16>
    %16 = vector.shape_cast %15 : vector<1x8x324xbf16> to vector<8x324xbf16>
    %17 = vector.shape_cast %12 : vector<8x324xbf16> to vector<1x8x324xbf16>
    tpu.vector_store %arg5[%c0_12, %c0_13, %c128], %17 {strides = array<i32>} : memref<1x8x580xbf16, #tpu.memory_space<vmem>>, vector<1x8x324xbf16>,
    return
  }
  func.func @transform_0(%arg0: i32) -> (i32, i32, i32) {
    %c0_i32 = arith.constant 0 : i32
    %c0_i32_0 = arith.constant 0 : i32
    %c0_i32_1 = arith.constant 0 : i32
    return %arg0, %c0_i32, %c0_i32_0 : i32, i32, i32
  }
  func.func @transform_1(%arg0: i32) -> (i32, i32) {
    %c0_i32 = arith.constant 0 : i32
    %c0_i32_0 = arith.constant 0 : i32
    %c0_i32_1 = arith.constant 0 : i32
    return %c0_i32, %c0_i32_0 : i32, i32
  }
  func.func @transform_2(%arg0: i32) -> (i32, i32, i32) {
    %c0_i32 = arith.constant 0 : i32
    %c0_i32_0 = arith.constant 0 : i32
    %c0_i32_1 = arith.constant 0 : i32
    return %arg0, %c0_i32, %c0_i32_0 : i32, i32, i32
  }
  func.func @transform_3(%arg0: i32) -> (i32, i32) {
    %c0_i32 = arith.constant 0 : i32
    %c0_i32_0 = arith.constant 0 : i32
    %c0_i32_1 = arith.constant 0 : i32
    return %c0_i32, %c0_i32_0 : i32, i32
  }
  func.func @transform_4(%arg0: i32) -> (i32, i32, i32) {
    %c0_i32 = arith.constant 0 : i32
    %c0_i32_0 = arith.constant 0 : i32
    %c0_i32_1 = arith.constant 0 : i32
    return %arg0, %c0_i32, %c0_i32_0 : i32, i32, i32
  }
}

module attributes {stable_mosaic.version = 11 : i64} {
  func.func @kernel(%arg0: i32, %arg1: memref<1x8x580xbf16, #tpu.memory_space<vmem>>, %arg2: memref<9x8x8xbf16, #tpu.memory_space<vmem>>, %arg3: memref<8x1xf32, #tpu.memory_space<vmem>>, %arg4: memref<1x324xf32, #tpu.memory_space<vmem>>, %arg5: memref<1x8x324xf32, #tpu.memory_space<vmem>>, %arg6: memref<1x8x1xf32, #tpu.memory_space<vmem>>, %arg7: memref<1x8x1xf32, #tpu.memory_space<vmem>>) attributes {dimension_semantics = [#tpu.dimension_semantics<parallel>], iteration_bounds = array<i64: 2>, scalar_prefetch = 0 : i64, scratch_operands = 0 : i64, tpu.core_type = #tpu.core_type<tc>, window_params = [{transform_indices = @transform_0, window_bounds = array<i64: 1, 8, 580>}, {pipeline_mode = #tpu.pipeline_mode<synchronous>, transform_indices = @transform_1, window_bounds = array<i64: 9, 8, 8>}, {pipeline_mode = #tpu.pipeline_mode<synchronous>, transform_indices = @transform_2, window_bounds = array<i64: 8, 1>}, {pipeline_mode = #tpu.pipeline_mode<synchronous>, transform_indices = @transform_3, window_bounds = array<i64: 1, 324>}, {transform_indices = @transform_4, window_bounds = array<i64: 1, 8, 324>}, {transform_indices = @transform_5, window_bounds = array<i64: 1, 8, 1>}, {transform_indices = @transform_6, window_bounds = array<i64: 1, 8, 1>}]} {
    %c0 = arith.constant 0 : index
    %c0_0 = arith.constant 0 : index
    %c109 = arith.constant 109 : index
    %0 = vector.load %arg1[%c0, %c0_0, %c109] : memref<1x8x580xbf16, #tpu.memory_space<vmem>>, vector<1x8x324xbf16>
    %1 = vector.shape_cast %0 : vector<1x8x324xbf16> to vector<8x324xbf16>
    %c0_1 = arith.constant 0 : index
    %c0_2 = arith.constant 0 : index
    %c0_3 = arith.constant 0 : index
    %2 = vector.load %arg2[%c0_1, %c0_2, %c0_3] : memref<9x8x8xbf16, #tpu.memory_space<vmem>>, vector<1x8x8xbf16>
    %3 = vector.shape_cast %2 : vector<1x8x8xbf16> to vector<8x8xbf16>
    %cst = arith.constant dense<0.000000e+00> : vector<8x324xf32>
    %4 = tpu.matmul %3, %1, %cst {dimension_numbers = #tpu.dot_dimension_numbers<[1], [0], [0], [1], [0, 0, 1, 1], [], []>} : vector<8x8xbf16>, vector<8x324xbf16>, vector<8x324xf32> -> vector<8x324xf32>
    %c0_4 = arith.constant 0 : index
    %c0_5 = arith.constant 0 : index
    %c110 = arith.constant 110 : index
    %5 = vector.load %arg1[%c0_4, %c0_5, %c110] : memref<1x8x580xbf16, #tpu.memory_space<vmem>>, vector<1x8x324xbf16>
    %6 = vector.shape_cast %5 : vector<1x8x324xbf16> to vector<8x324xbf16>
    %c1 = arith.constant 1 : index
    %c0_6 = arith.constant 0 : index
    %c0_7 = arith.constant 0 : index
    %7 = vector.load %arg2[%c1, %c0_6, %c0_7] : memref<9x8x8xbf16, #tpu.memory_space<vmem>>, vector<1x8x8xbf16>
    %8 = vector.shape_cast %7 : vector<1x8x8xbf16> to vector<8x8xbf16>
    %cst_8 = arith.constant dense<0.000000e+00> : vector<8x324xf32>
    %9 = tpu.matmul %8, %6, %cst_8 {dimension_numbers = #tpu.dot_dimension_numbers<[1], [0], [0], [1], [0, 0, 1, 1], [], []>} : vector<8x8xbf16>, vector<8x324xbf16>, vector<8x324xf32> -> vector<8x324xf32>
    %10 = arith.addf %4, %9 : vector<8x324xf32>
    %c0_9 = arith.constant 0 : index
    %c0_10 = arith.constant 0 : index
    %c111 = arith.constant 111 : index
    %11 = vector.load %arg1[%c0_9, %c0_10, %c111] : memref<1x8x580xbf16, #tpu.memory_space<vmem>>, vector<1x8x324xbf16>
    %12 = vector.shape_cast %11 : vector<1x8x324xbf16> to vector<8x324xbf16>
    %c2 = arith.constant 2 : index
    %c0_11 = arith.constant 0 : index
    %c0_12 = arith.constant 0 : index
    %13 = vector.load %arg2[%c2, %c0_11, %c0_12] : memref<9x8x8xbf16, #tpu.memory_space<vmem>>, vector<1x8x8xbf16>
    %14 = vector.shape_cast %13 : vector<1x8x8xbf16> to vector<8x8xbf16>
    %cst_13 = arith.constant dense<0.000000e+00> : vector<8x324xf32>
    %15 = tpu.matmul %14, %12, %cst_13 {dimension_numbers = #tpu.dot_dimension_numbers<[1], [0], [0], [1], [0, 0, 1, 1], [], []>} : vector<8x8xbf16>, vector<8x324xbf16>, vector<8x324xf32> -> vector<8x324xf32>
    %16 = arith.addf %10, %15 : vector<8x324xf32>
    %c0_14 = arith.constant 0 : index
    %c0_15 = arith.constant 0 : index
    %c127 = arith.constant 127 : index
    %17 = vector.load %arg1[%c0_14, %c0_15, %c127] : memref<1x8x580xbf16, #tpu.memory_space<vmem>>, vector<1x8x324xbf16>
    %18 = vector.shape_cast %17 : vector<1x8x324xbf16> to vector<8x324xbf16>
    %c3 = arith.constant 3 : index
    %c0_16 = arith.constant 0 : index
    %c0_17 = arith.constant 0 : index
    %19 = vector.load %arg2[%c3, %c0_16, %c0_17] : memref<9x8x8xbf16, #tpu.memory_space<vmem>>, vector<1x8x8xbf16>
    %20 = vector.shape_cast %19 : vector<1x8x8xbf16> to vector<8x8xbf16>
    %cst_18 = arith.constant dense<0.000000e+00> : vector<8x324xf32>
    %21 = tpu.matmul %20, %18, %cst_18 {dimension_numbers = #tpu.dot_dimension_numbers<[1], [0], [0], [1], [0, 0, 1, 1], [], []>} : vector<8x8xbf16>, vector<8x324xbf16>, vector<8x324xf32> -> vector<8x324xf32>
    %22 = arith.addf %16, %21 : vector<8x324xf32>
    %c0_19 = arith.constant 0 : index
    %c0_20 = arith.constant 0 : index
    %c128 = arith.constant 128 : index
    %23 = vector.load %arg1[%c0_19, %c0_20, %c128] : memref<1x8x580xbf16, #tpu.memory_space<vmem>>, vector<1x8x324xbf16>
    %24 = vector.shape_cast %23 : vector<1x8x324xbf16> to vector<8x324xbf16>
    %c4 = arith.constant 4 : index
    %c0_21 = arith.constant 0 : index
    %c0_22 = arith.constant 0 : index
    %25 = vector.load %arg2[%c4, %c0_21, %c0_22] : memref<9x8x8xbf16, #tpu.memory_space<vmem>>, vector<1x8x8xbf16>
    %26 = vector.shape_cast %25 : vector<1x8x8xbf16> to vector<8x8xbf16>
    %cst_23 = arith.constant dense<0.000000e+00> : vector<8x324xf32>
    %27 = tpu.matmul %26, %24, %cst_23 {dimension_numbers = #tpu.dot_dimension_numbers<[1], [0], [0], [1], [0, 0, 1, 1], [], []>} : vector<8x8xbf16>, vector<8x324xbf16>, vector<8x324xf32> -> vector<8x324xf32>
    %28 = arith.addf %22, %27 : vector<8x324xf32>
    %c0_24 = arith.constant 0 : index
    %c0_25 = arith.constant 0 : index
    %c129 = arith.constant 129 : index
    %29 = vector.load %arg1[%c0_24, %c0_25, %c129] : memref<1x8x580xbf16, #tpu.memory_space<vmem>>, vector<1x8x324xbf16>
    %30 = vector.shape_cast %29 : vector<1x8x324xbf16> to vector<8x324xbf16>
    %c5 = arith.constant 5 : index
    %c0_26 = arith.constant 0 : index
    %c0_27 = arith.constant 0 : index
    %31 = vector.load %arg2[%c5, %c0_26, %c0_27] : memref<9x8x8xbf16, #tpu.memory_space<vmem>>, vector<1x8x8xbf16>
    %32 = vector.shape_cast %31 : vector<1x8x8xbf16> to vector<8x8xbf16>
    %cst_28 = arith.constant dense<0.000000e+00> : vector<8x324xf32>
    %33 = tpu.matmul %32, %30, %cst_28 {dimension_numbers = #tpu.dot_dimension_numbers<[1], [0], [0], [1], [0, 0, 1, 1], [], []>} : vector<8x8xbf16>, vector<8x324xbf16>, vector<8x324xf32> -> vector<8x324xf32>
    %34 = arith.addf %28, %33 : vector<8x324xf32>
    %c0_29 = arith.constant 0 : index
    %c0_30 = arith.constant 0 : index
    %c145 = arith.constant 145 : index
    %35 = vector.load %arg1[%c0_29, %c0_30, %c145] : memref<1x8x580xbf16, #tpu.memory_space<vmem>>, vector<1x8x324xbf16>
    %36 = vector.shape_cast %35 : vector<1x8x324xbf16> to vector<8x324xbf16>
    %c6 = arith.constant 6 : index
    %c0_31 = arith.constant 0 : index
    %c0_32 = arith.constant 0 : index
    %37 = vector.load %arg2[%c6, %c0_31, %c0_32] : memref<9x8x8xbf16, #tpu.memory_space<vmem>>, vector<1x8x8xbf16>
    %38 = vector.shape_cast %37 : vector<1x8x8xbf16> to vector<8x8xbf16>
    %cst_33 = arith.constant dense<0.000000e+00> : vector<8x324xf32>
    %39 = tpu.matmul %38, %36, %cst_33 {dimension_numbers = #tpu.dot_dimension_numbers<[1], [0], [0], [1], [0, 0, 1, 1], [], []>} : vector<8x8xbf16>, vector<8x324xbf16>, vector<8x324xf32> -> vector<8x324xf32>
    %40 = arith.addf %34, %39 : vector<8x324xf32>
    %c0_34 = arith.constant 0 : index
    %c0_35 = arith.constant 0 : index
    %c146 = arith.constant 146 : index
    %41 = vector.load %arg1[%c0_34, %c0_35, %c146] : memref<1x8x580xbf16, #tpu.memory_space<vmem>>, vector<1x8x324xbf16>
    %42 = vector.shape_cast %41 : vector<1x8x324xbf16> to vector<8x324xbf16>
    %c7 = arith.constant 7 : index
    %c0_36 = arith.constant 0 : index
    %c0_37 = arith.constant 0 : index
    %43 = vector.load %arg2[%c7, %c0_36, %c0_37] : memref<9x8x8xbf16, #tpu.memory_space<vmem>>, vector<1x8x8xbf16>
    %44 = vector.shape_cast %43 : vector<1x8x8xbf16> to vector<8x8xbf16>
    %cst_38 = arith.constant dense<0.000000e+00> : vector<8x324xf32>
    %45 = tpu.matmul %44, %42, %cst_38 {dimension_numbers = #tpu.dot_dimension_numbers<[1], [0], [0], [1], [0, 0, 1, 1], [], []>} : vector<8x8xbf16>, vector<8x324xbf16>, vector<8x324xf32> -> vector<8x324xf32>
    %46 = arith.addf %40, %45 : vector<8x324xf32>
    %c0_39 = arith.constant 0 : index
    %c0_40 = arith.constant 0 : index
    %c147 = arith.constant 147 : index
    %47 = vector.load %arg1[%c0_39, %c0_40, %c147] : memref<1x8x580xbf16, #tpu.memory_space<vmem>>, vector<1x8x324xbf16>
    %48 = vector.shape_cast %47 : vector<1x8x324xbf16> to vector<8x324xbf16>
    %c8 = arith.constant 8 : index
    %c0_41 = arith.constant 0 : index
    %c0_42 = arith.constant 0 : index
    %49 = vector.load %arg2[%c8, %c0_41, %c0_42] : memref<9x8x8xbf16, #tpu.memory_space<vmem>>, vector<1x8x8xbf16>
    %50 = vector.shape_cast %49 : vector<1x8x8xbf16> to vector<8x8xbf16>
    %cst_43 = arith.constant dense<0.000000e+00> : vector<8x324xf32>
    %51 = tpu.matmul %50, %48, %cst_43 {dimension_numbers = #tpu.dot_dimension_numbers<[1], [0], [0], [1], [0, 0, 1, 1], [], []>} : vector<8x8xbf16>, vector<8x324xbf16>, vector<8x324xf32> -> vector<8x324xf32>
    %52 = arith.addf %46, %51 : vector<8x324xf32>
    %c0_44 = arith.constant 0 : index
    %c0_45 = arith.constant 0 : index
    %53 = vector.load %arg3[%c0_44, %c0_45] : memref<8x1xf32, #tpu.memory_space<vmem>>, vector<8x1xf32>
    %54 = vector.broadcast %53 : vector<8x1xf32> to vector<8x324xf32>
    %55 = arith.addf %52, %54 : vector<8x324xf32>
    %cst_46 = arith.constant 0.000000e+00 : f32
    %56 = vector.broadcast %cst_46 : f32 to vector<8x324xf32>
    %57 = arith.maximumf %55, %56 : vector<8x324xf32>
    %c0_47 = arith.constant 0 : index
    %c0_48 = arith.constant 0 : index
    %58 = vector.load %arg4[%c0_47, %c0_48] : memref<1x324xf32, #tpu.memory_space<vmem>>, vector<1x324xf32>
    %59 = vector.broadcast %58 : vector<1x324xf32> to vector<8x324xf32>
    %60 = arith.mulf %57, %59 : vector<8x324xf32>
    %c0_49 = arith.constant 0 : index
    %c0_50 = arith.constant 0 : index
    %c0_51 = arith.constant 0 : index
    %61 = vector.load %arg5[%c0_49, %c0_50, %c0_51] : memref<1x8x324xf32, #tpu.memory_space<vmem>>, vector<1x8x324xf32>
    %62 = vector.shape_cast %61 : vector<1x8x324xf32> to vector<8x324xf32>
    %63 = vector.shape_cast %60 : vector<8x324xf32> to vector<1x8x324xf32>
    tpu.vector_store %arg5[%c0_49, %c0_50, %c0_51], %63 {strides = array<i32>} : memref<1x8x324xf32, #tpu.memory_space<vmem>>, vector<1x8x324xf32>,
    %cst_52 = arith.constant dense<0.000000e+00> : vector<8xf32>
    %64 = vector.multi_reduction <add>, %60, %cst_52 [1] : vector<8x324xf32> to vector<8xf32>
    %65 = vector.shape_cast %64 : vector<8xf32> to vector<8x1xf32>
    %c0_53 = arith.constant 0 : index
    %c0_54 = arith.constant 0 : index
    %c0_55 = arith.constant 0 : index
    %66 = vector.load %arg6[%c0_53, %c0_54, %c0_55] : memref<1x8x1xf32, #tpu.memory_space<vmem>>, vector<1x8x1xf32>
    %67 = vector.shape_cast %66 : vector<1x8x1xf32> to vector<8x1xf32>
    %68 = vector.shape_cast %65 : vector<8x1xf32> to vector<1x8x1xf32>
    tpu.vector_store %arg6[%c0_53, %c0_54, %c0_55], %68 {strides = array<i32>} : memref<1x8x1xf32, #tpu.memory_space<vmem>>, vector<1x8x1xf32>,
    %69 = arith.mulf %60, %60 : vector<8x324xf32>
    %cst_56 = arith.constant dense<0.000000e+00> : vector<8xf32>
    %70 = vector.multi_reduction <add>, %69, %cst_56 [1] : vector<8x324xf32> to vector<8xf32>
    %71 = vector.shape_cast %70 : vector<8xf32> to vector<8x1xf32>
    %c0_57 = arith.constant 0 : index
    %c0_58 = arith.constant 0 : index
    %c0_59 = arith.constant 0 : index
    %72 = vector.load %arg7[%c0_57, %c0_58, %c0_59] : memref<1x8x1xf32, #tpu.memory_space<vmem>>, vector<1x8x1xf32>
    %73 = vector.shape_cast %72 : vector<1x8x1xf32> to vector<8x1xf32>
    %74 = vector.shape_cast %71 : vector<8x1xf32> to vector<1x8x1xf32>
    tpu.vector_store %arg7[%c0_57, %c0_58, %c0_59], %74 {strides = array<i32>} : memref<1x8x1xf32, #tpu.memory_space<vmem>>, vector<1x8x1xf32>,
    return
  }
  func.func @transform_0(%arg0: i32) -> (i32, i32, i32) {
    %c0_i32 = arith.constant 0 : i32
    %c0_i32_0 = arith.constant 0 : i32
    %c0_i32_1 = arith.constant 0 : i32
    return %arg0, %c0_i32, %c0_i32_0 : i32, i32, i32
  }
  func.func @transform_1(%arg0: i32) -> (i32, i32, i32) {
    %c0_i32 = arith.constant 0 : i32
    %c0_i32_0 = arith.constant 0 : i32
    %c0_i32_1 = arith.constant 0 : i32
    %c0_i32_2 = arith.constant 0 : i32
    return %c0_i32, %c0_i32_0, %c0_i32_1 : i32, i32, i32
  }
  func.func @transform_2(%arg0: i32) -> (i32, i32) {
    %c0_i32 = arith.constant 0 : i32
    %c0_i32_0 = arith.constant 0 : i32
    %c0_i32_1 = arith.constant 0 : i32
    return %c0_i32, %c0_i32_0 : i32, i32
  }
  func.func @transform_3(%arg0: i32) -> (i32, i32) {
    %c0_i32 = arith.constant 0 : i32
    %c0_i32_0 = arith.constant 0 : i32
    %c0_i32_1 = arith.constant 0 : i32
    return %c0_i32, %c0_i32_0 : i32, i32
  }
  func.func @transform_4(%arg0: i32) -> (i32, i32, i32) {
    %c0_i32 = arith.constant 0 : i32
    %c0_i32_0 = arith.constant 0 : i32
    %c0_i32_1 = arith.constant 0 : i32
    return %arg0, %c0_i32, %c0_i32_0 : i32, i32, i32
  }
  func.func @transform_5(%arg0: i32) -> (i32, i32, i32) {
    %c0_i32 = arith.constant 0 : i32
    %c0_i32_0 = arith.constant 0 : i32
    %c0_i32_1 = arith.constant 0 : i32
    return %arg0, %c0_i32, %c0_i32_0 : i32, i32, i32
  }
  func.func @transform_6(%arg0: i32) -> (i32, i32, i32) {
    %c0_i32 = arith.constant 0 : i32
    %c0_i32_0 = arith.constant 0 : i32
    %c0_i32_1 = arith.constant 0 : i32
    return %arg0, %c0_i32, %c0_i32_0 : i32, i32, i32
  }
}

module attributes {stable_mosaic.version = 11 : i64} {
  func.func @kernel(%arg0: i32, %arg1: memref<1x8x324xf32, #tpu.memory_space<vmem>>, %arg2: memref<8x1xf32, #tpu.memory_space<vmem>>, %arg3: memref<1x8x1xf32, #tpu.memory_space<vmem>>, %arg4: memref<1x324xf32, #tpu.memory_space<vmem>>, %arg5: memref<1x8x324xbf16, #tpu.memory_space<vmem>>) attributes {dimension_semantics = [#tpu.dimension_semantics<parallel>], iteration_bounds = array<i64: 2>, scalar_prefetch = 0 : i64, scratch_operands = 0 : i64, tpu.core_type = #tpu.core_type<tc>, window_params = [{transform_indices = @transform_0, window_bounds = array<i64: 1, 8, 324>}, {pipeline_mode = #tpu.pipeline_mode<synchronous>, transform_indices = @transform_1, window_bounds = array<i64: 8, 1>}, {transform_indices = @transform_2, window_bounds = array<i64: 1, 8, 1>}, {pipeline_mode = #tpu.pipeline_mode<synchronous>, transform_indices = @transform_3, window_bounds = array<i64: 1, 324>}, {transform_indices = @transform_4, window_bounds = array<i64: 1, 8, 324>}]} {
    %c0 = arith.constant 0 : index
    %c0_0 = arith.constant 0 : index
    %c0_1 = arith.constant 0 : index
    %0 = vector.load %arg1[%c0, %c0_0, %c0_1] : memref<1x8x324xf32, #tpu.memory_space<vmem>>, vector<1x8x324xf32>
    %1 = vector.shape_cast %0 : vector<1x8x324xf32> to vector<8x324xf32>
    %c0_2 = arith.constant 0 : index
    %c0_3 = arith.constant 0 : index
    %2 = vector.load %arg2[%c0_2, %c0_3] : memref<8x1xf32, #tpu.memory_space<vmem>>, vector<8x1xf32>
    %3 = vector.broadcast %2 : vector<8x1xf32> to vector<8x324xf32>
    %4 = arith.mulf %1, %3 : vector<8x324xf32>
    %c0_4 = arith.constant 0 : index
    %c0_5 = arith.constant 0 : index
    %c0_6 = arith.constant 0 : index
    %5 = vector.load %arg3[%c0_4, %c0_5, %c0_6] : memref<1x8x1xf32, #tpu.memory_space<vmem>>, vector<1x8x1xf32>
    %6 = vector.shape_cast %5 : vector<1x8x1xf32> to vector<8x1xf32>
    %7 = vector.broadcast %6 : vector<8x1xf32> to vector<8x324xf32>
    %8 = arith.addf %4, %7 : vector<8x324xf32>
    %c0_7 = arith.constant 0 : index
    %c0_8 = arith.constant 0 : index
    %9 = vector.load %arg4[%c0_7, %c0_8] : memref<1x324xf32, #tpu.memory_space<vmem>>, vector<1x324xf32>
    %10 = vector.broadcast %9 : vector<1x324xf32> to vector<8x324xf32>
    %11 = arith.mulf %8, %10 : vector<8x324xf32>
    %12 = arith.truncf %11 : vector<8x324xf32> to vector<8x324xbf16>
    %c0_9 = arith.constant 0 : index
    %c0_10 = arith.constant 0 : index
    %c0_11 = arith.constant 0 : index
    %13 = vector.load %arg5[%c0_9, %c0_10, %c0_11] : memref<1x8x324xbf16, #tpu.memory_space<vmem>>, vector<1x8x324xbf16>
    %14 = vector.shape_cast %13 : vector<1x8x324xbf16> to vector<8x324xbf16>
    %15 = vector.shape_cast %12 : vector<8x324xbf16> to vector<1x8x324xbf16>
    tpu.vector_store %arg5[%c0_9, %c0_10, %c0_11], %15 {strides = array<i32>} : memref<1x8x324xbf16, #tpu.memory_space<vmem>>, vector<1x8x324xbf16>,
    return
  }
  func.func @transform_0(%arg0: i32) -> (i32, i32, i32) {
    %c0_i32 = arith.constant 0 : i32
    %c0_i32_0 = arith.constant 0 : i32
    %c0_i32_1 = arith.constant 0 : i32
    return %arg0, %c0_i32, %c0_i32_0 : i32, i32, i32
  }
  func.func @transform_1(%arg0: i32) -> (i32, i32) {
    %c0_i32 = arith.constant 0 : i32
    %c0_i32_0 = arith.constant 0 : i32
    %c0_i32_1 = arith.constant 0 : i32
    return %c0_i32, %c0_i32_0 : i32, i32
  }
  func.func @transform_2(%arg0: i32) -> (i32, i32, i32) {
    %c0_i32 = arith.constant 0 : i32
    %c0_i32_0 = arith.constant 0 : i32
    %c0_i32_1 = arith.constant 0 : i32
    return %arg0, %c0_i32, %c0_i32_0 : i32, i32, i32
  }
  func.func @transform_3(%arg0: i32) -> (i32, i32) {
    %c0_i32 = arith.constant 0 : i32
    %c0_i32_0 = arith.constant 0 : i32
    %c0_i32_1 = arith.constant 0 : i32
    return %c0_i32, %c0_i32_0 : i32, i32
  }
  func.func @transform_4(%arg0: i32) -> (i32, i32, i32) {
    %c0_i32 = arith.constant 0 : i32
    %c0_i32_0 = arith.constant 0 : i32
    %c0_i32_1 = arith.constant 0 : i32
    return %arg0, %c0_i32, %c0_i32_0 : i32, i32, i32
  }
}

module attributes {stable_mosaic.version = 11 : i64} {
  func.func @kernel(%arg0: i32, %arg1: memref<1x32x91xbf16, #tpu.memory_space<vmem>>, %arg2: memref<16x8x8xbf16, #tpu.memory_space<vmem>>, %arg3: memref<8x1xf32, #tpu.memory_space<vmem>>, %arg4: memref<1x8x81xf32, #tpu.memory_space<vmem>>) attributes {dimension_semantics = [#tpu.dimension_semantics<parallel>], iteration_bounds = array<i64: 2>, scalar_prefetch = 0 : i64, scratch_operands = 0 : i64, tpu.core_type = #tpu.core_type<tc>, window_params = [{transform_indices = @transform_0, window_bounds = array<i64: 1, 32, 91>}, {pipeline_mode = #tpu.pipeline_mode<synchronous>, transform_indices = @transform_1, window_bounds = array<i64: 16, 8, 8>}, {pipeline_mode = #tpu.pipeline_mode<synchronous>, transform_indices = @transform_2, window_bounds = array<i64: 8, 1>}, {transform_indices = @transform_3, window_bounds = array<i64: 1, 8, 81>}]} {
    %c0 = arith.constant 0 : index
    %c0_0 = arith.constant 0 : index
    %c0_1 = arith.constant 0 : index
    %0 = vector.load %arg1[%c0, %c0_0, %c0_1] : memref<1x32x91xbf16, #tpu.memory_space<vmem>>, vector<1x8x81xbf16>
    %1 = vector.shape_cast %0 : vector<1x8x81xbf16> to vector<8x81xbf16>
    %c0_2 = arith.constant 0 : index
    %c0_3 = arith.constant 0 : index
    %c0_4 = arith.constant 0 : index
    %2 = vector.load %arg2[%c0_2, %c0_3, %c0_4] : memref<16x8x8xbf16, #tpu.memory_space<vmem>>, vector<1x8x8xbf16>
    %3 = vector.shape_cast %2 : vector<1x8x8xbf16> to vector<8x8xbf16>
    %cst = arith.constant dense<0.000000e+00> : vector<8x81xf32>
    %4 = tpu.matmul %3, %1, %cst {dimension_numbers = #tpu.dot_dimension_numbers<[1], [0], [0], [1], [0, 0, 1, 1], [], []>} : vector<8x8xbf16>, vector<8x81xbf16>, vector<8x81xf32> -> vector<8x81xf32>
    %c0_5 = arith.constant 0 : index
    %c8 = arith.constant 8 : index
    %c0_6 = arith.constant 0 : index
    %5 = vector.load %arg1[%c0_5, %c8, %c0_6] : memref<1x32x91xbf16, #tpu.memory_space<vmem>>, vector<1x8x81xbf16>
    %6 = vector.shape_cast %5 : vector<1x8x81xbf16> to vector<8x81xbf16>
    %c1 = arith.constant 1 : index
    %c0_7 = arith.constant 0 : index
    %c0_8 = arith.constant 0 : index
    %7 = vector.load %arg2[%c1, %c0_7, %c0_8] : memref<16x8x8xbf16, #tpu.memory_space<vmem>>, vector<1x8x8xbf16>
    %8 = vector.shape_cast %7 : vector<1x8x8xbf16> to vector<8x8xbf16>
    %cst_9 = arith.constant dense<0.000000e+00> : vector<8x81xf32>
    %9 = tpu.matmul %8, %6, %cst_9 {dimension_numbers = #tpu.dot_dimension_numbers<[1], [0], [0], [1], [0, 0, 1, 1], [], []>} : vector<8x8xbf16>, vector<8x81xbf16>, vector<8x81xf32> -> vector<8x81xf32>
    %10 = arith.addf %4, %9 : vector<8x81xf32>
    %c0_10 = arith.constant 0 : index
    %c0_11 = arith.constant 0 : index
    %c1_12 = arith.constant 1 : index
    %11 = vector.load %arg1[%c0_10, %c0_11, %c1_12] : memref<1x32x91xbf16, #tpu.memory_space<vmem>>, vector<1x8x81xbf16>
    %12 = vector.shape_cast %11 : vector<1x8x81xbf16> to vector<8x81xbf16>
    %c2 = arith.constant 2 : index
    %c0_13 = arith.constant 0 : index
    %c0_14 = arith.constant 0 : index
    %13 = vector.load %arg2[%c2, %c0_13, %c0_14] : memref<16x8x8xbf16, #tpu.memory_space<vmem>>, vector<1x8x8xbf16>
    %14 = vector.shape_cast %13 : vector<1x8x8xbf16> to vector<8x8xbf16>
    %cst_15 = arith.constant dense<0.000000e+00> : vector<8x81xf32>
    %15 = tpu.matmul %14, %12, %cst_15 {dimension_numbers = #tpu.dot_dimension_numbers<[1], [0], [0], [1], [0, 0, 1, 1], [], []>} : vector<8x8xbf16>, vector<8x81xbf16>, vector<8x81xf32> -> vector<8x81xf32>
    %16 = arith.addf %10, %15 : vector<8x81xf32>
    %c0_16 = arith.constant 0 : index
    %c8_17 = arith.constant 8 : index
    %c1_18 = arith.constant 1 : index
    %17 = vector.load %arg1[%c0_16, %c8_17, %c1_18] : memref<1x32x91xbf16, #tpu.memory_space<vmem>>, vector<1x8x81xbf16>
    %18 = vector.shape_cast %17 : vector<1x8x81xbf16> to vector<8x81xbf16>
    %c3 = arith.constant 3 : index
    %c0_19 = arith.constant 0 : index
    %c0_20 = arith.constant 0 : index
    %19 = vector.load %arg2[%c3, %c0_19, %c0_20] : memref<16x8x8xbf16, #tpu.memory_space<vmem>>, vector<1x8x8xbf16>
    %20 = vector.shape_cast %19 : vector<1x8x8xbf16> to vector<8x8xbf16>
    %cst_21 = arith.constant dense<0.000000e+00> : vector<8x81xf32>
    %21 = tpu.matmul %20, %18, %cst_21 {dimension_numbers = #tpu.dot_dimension_numbers<[1], [0], [0], [1], [0, 0, 1, 1], [], []>} : vector<8x8xbf16>, vector<8x81xbf16>, vector<8x81xf32> -> vector<8x81xf32>
    %22 = arith.addf %16, %21 : vector<8x81xf32>
    %c0_22 = arith.constant 0 : index
    %c16 = arith.constant 16 : index
    %c0_23 = arith.constant 0 : index
    %23 = vector.load %arg1[%c0_22, %c16, %c0_23] : memref<1x32x91xbf16, #tpu.memory_space<vmem>>, vector<1x8x81xbf16>
    %24 = vector.shape_cast %23 : vector<1x8x81xbf16> to vector<8x81xbf16>
    %c4 = arith.constant 4 : index
    %c0_24 = arith.constant 0 : index
    %c0_25 = arith.constant 0 : index
    %25 = vector.load %arg2[%c4, %c0_24, %c0_25] : memref<16x8x8xbf16, #tpu.memory_space<vmem>>, vector<1x8x8xbf16>
    %26 = vector.shape_cast %25 : vector<1x8x8xbf16> to vector<8x8xbf16>
    %cst_26 = arith.constant dense<0.000000e+00> : vector<8x81xf32>
    %27 = tpu.matmul %26, %24, %cst_26 {dimension_numbers = #tpu.dot_dimension_numbers<[1], [0], [0], [1], [0, 0, 1, 1], [], []>} : vector<8x8xbf16>, vector<8x81xbf16>, vector<8x81xf32> -> vector<8x81xf32>
    %28 = arith.addf %22, %27 : vector<8x81xf32>
    %c0_27 = arith.constant 0 : index
    %c24 = arith.constant 24 : index
    %c0_28 = arith.constant 0 : index
    %29 = vector.load %arg1[%c0_27, %c24, %c0_28] : memref<1x32x91xbf16, #tpu.memory_space<vmem>>, vector<1x8x81xbf16>
    %30 = vector.shape_cast %29 : vector<1x8x81xbf16> to vector<8x81xbf16>
    %c5 = arith.constant 5 : index
    %c0_29 = arith.constant 0 : index
    %c0_30 = arith.constant 0 : index
    %31 = vector.load %arg2[%c5, %c0_29, %c0_30] : memref<16x8x8xbf16, #tpu.memory_space<vmem>>, vector<1x8x8xbf16>
    %32 = vector.shape_cast %31 : vector<1x8x8xbf16> to vector<8x8xbf16>
    %cst_31 = arith.constant dense<0.000000e+00> : vector<8x81xf32>
    %33 = tpu.matmul %32, %30, %cst_31 {dimension_numbers = #tpu.dot_dimension_numbers<[1], [0], [0], [1], [0, 0, 1, 1], [], []>} : vector<8x8xbf16>, vector<8x81xbf16>, vector<8x81xf32> -> vector<8x81xf32>
    %34 = arith.addf %28, %33 : vector<8x81xf32>
    %c0_32 = arith.constant 0 : index
    %c16_33 = arith.constant 16 : index
    %c1_34 = arith.constant 1 : index
    %35 = vector.load %arg1[%c0_32, %c16_33, %c1_34] : memref<1x32x91xbf16, #tpu.memory_space<vmem>>, vector<1x8x81xbf16>
    %36 = vector.shape_cast %35 : vector<1x8x81xbf16> to vector<8x81xbf16>
    %c6 = arith.constant 6 : index
    %c0_35 = arith.constant 0 : index
    %c0_36 = arith.constant 0 : index
    %37 = vector.load %arg2[%c6, %c0_35, %c0_36] : memref<16x8x8xbf16, #tpu.memory_space<vmem>>, vector<1x8x8xbf16>
    %38 = vector.shape_cast %37 : vector<1x8x8xbf16> to vector<8x8xbf16>
    %cst_37 = arith.constant dense<0.000000e+00> : vector<8x81xf32>
    %39 = tpu.matmul %38, %36, %cst_37 {dimension_numbers = #tpu.dot_dimension_numbers<[1], [0], [0], [1], [0, 0, 1, 1], [], []>} : vector<8x8xbf16>, vector<8x81xbf16>, vector<8x81xf32> -> vector<8x81xf32>
    %40 = arith.addf %34, %39 : vector<8x81xf32>
    %c0_38 = arith.constant 0 : index
    %c24_39 = arith.constant 24 : index
    %c1_40 = arith.constant 1 : index
    %41 = vector.load %arg1[%c0_38, %c24_39, %c1_40] : memref<1x32x91xbf16, #tpu.memory_space<vmem>>, vector<1x8x81xbf16>
    %42 = vector.shape_cast %41 : vector<1x8x81xbf16> to vector<8x81xbf16>
    %c7 = arith.constant 7 : index
    %c0_41 = arith.constant 0 : index
    %c0_42 = arith.constant 0 : index
    %43 = vector.load %arg2[%c7, %c0_41, %c0_42] : memref<16x8x8xbf16, #tpu.memory_space<vmem>>, vector<1x8x8xbf16>
    %44 = vector.shape_cast %43 : vector<1x8x8xbf16> to vector<8x8xbf16>
    %cst_43 = arith.constant dense<0.000000e+00> : vector<8x81xf32>
    %45 = tpu.matmul %44, %42, %cst_43 {dimension_numbers = #tpu.dot_dimension_numbers<[1], [0], [0], [1], [0, 0, 1, 1], [], []>} : vector<8x8xbf16>, vector<8x81xbf16>, vector<8x81xf32> -> vector<8x81xf32>
    %46 = arith.addf %40, %45 : vector<8x81xf32>
    %c0_44 = arith.constant 0 : index
    %c0_45 = arith.constant 0 : index
    %c9 = arith.constant 9 : index
    %47 = vector.load %arg1[%c0_44, %c0_45, %c9] : memref<1x32x91xbf16, #tpu.memory_space<vmem>>, vector<1x8x81xbf16>
    %48 = vector.shape_cast %47 : vector<1x8x81xbf16> to vector<8x81xbf16>
    %c8_46 = arith.constant 8 : index
    %c0_47 = arith.constant 0 : index
    %c0_48 = arith.constant 0 : index
    %49 = vector.load %arg2[%c8_46, %c0_47, %c0_48] : memref<16x8x8xbf16, #tpu.memory_space<vmem>>, vector<1x8x8xbf16>
    %50 = vector.shape_cast %49 : vector<1x8x8xbf16> to vector<8x8xbf16>
    %cst_49 = arith.constant dense<0.000000e+00> : vector<8x81xf32>
    %51 = tpu.matmul %50, %48, %cst_49 {dimension_numbers = #tpu.dot_dimension_numbers<[1], [0], [0], [1], [0, 0, 1, 1], [], []>} : vector<8x8xbf16>, vector<8x81xbf16>, vector<8x81xf32> -> vector<8x81xf32>
    %52 = arith.addf %46, %51 : vector<8x81xf32>
    %c0_50 = arith.constant 0 : index
    %c8_51 = arith.constant 8 : index
    %c9_52 = arith.constant 9 : index
    %53 = vector.load %arg1[%c0_50, %c8_51, %c9_52] : memref<1x32x91xbf16, #tpu.memory_space<vmem>>, vector<1x8x81xbf16>
    %54 = vector.shape_cast %53 : vector<1x8x81xbf16> to vector<8x81xbf16>
    %c9_53 = arith.constant 9 : index
    %c0_54 = arith.constant 0 : index
    %c0_55 = arith.constant 0 : index
    %55 = vector.load %arg2[%c9_53, %c0_54, %c0_55] : memref<16x8x8xbf16, #tpu.memory_space<vmem>>, vector<1x8x8xbf16>
    %56 = vector.shape_cast %55 : vector<1x8x8xbf16> to vector<8x8xbf16>
    %cst_56 = arith.constant dense<0.000000e+00> : vector<8x81xf32>
    %57 = tpu.matmul %56, %54, %cst_56 {dimension_numbers = #tpu.dot_dimension_numbers<[1], [0], [0], [1], [0, 0, 1, 1], [], []>} : vector<8x8xbf16>, vector<8x81xbf16>, vector<8x81xf32> -> vector<8x81xf32>
    %58 = arith.addf %52, %57 : vector<8x81xf32>
    %c0_57 = arith.constant 0 : index
    %c0_58 = arith.constant 0 : index
    %c10 = arith.constant 10 : index
    %59 = vector.load %arg1[%c0_57, %c0_58, %c10] : memref<1x32x91xbf16, #tpu.memory_space<vmem>>, vector<1x8x81xbf16>
    %60 = vector.shape_cast %59 : vector<1x8x81xbf16> to vector<8x81xbf16>
    %c10_59 = arith.constant 10 : index
    %c0_60 = arith.constant 0 : index
    %c0_61 = arith.constant 0 : index
    %61 = vector.load %arg2[%c10_59, %c0_60, %c0_61] : memref<16x8x8xbf16, #tpu.memory_space<vmem>>, vector<1x8x8xbf16>
    %62 = vector.shape_cast %61 : vector<1x8x8xbf16> to vector<8x8xbf16>
    %cst_62 = arith.constant dense<0.000000e+00> : vector<8x81xf32>
    %63 = tpu.matmul %62, %60, %cst_62 {dimension_numbers = #tpu.dot_dimension_numbers<[1], [0], [0], [1], [0, 0, 1, 1], [], []>} : vector<8x8xbf16>, vector<8x81xbf16>, vector<8x81xf32> -> vector<8x81xf32>
    %64 = arith.addf %58, %63 : vector<8x81xf32>
    %c0_63 = arith.constant 0 : index
    %c8_64 = arith.constant 8 : index
    %c10_65 = arith.constant 10 : index
    %65 = vector.load %arg1[%c0_63, %c8_64, %c10_65] : memref<1x32x91xbf16, #tpu.memory_space<vmem>>, vector<1x8x81xbf16>
    %66 = vector.shape_cast %65 : vector<1x8x81xbf16> to vector<8x81xbf16>
    %c11 = arith.constant 11 : index
    %c0_66 = arith.constant 0 : index
    %c0_67 = arith.constant 0 : index
    %67 = vector.load %arg2[%c11, %c0_66, %c0_67] : memref<16x8x8xbf16, #tpu.memory_space<vmem>>, vector<1x8x8xbf16>
    %68 = vector.shape_cast %67 : vector<1x8x8xbf16> to vector<8x8xbf16>
    %cst_68 = arith.constant dense<0.000000e+00> : vector<8x81xf32>
    %69 = tpu.matmul %68, %66, %cst_68 {dimension_numbers = #tpu.dot_dimension_numbers<[1], [0], [0], [1], [0, 0, 1, 1], [], []>} : vector<8x8xbf16>, vector<8x81xbf16>, vector<8x81xf32> -> vector<8x81xf32>
    %70 = arith.addf %64, %69 : vector<8x81xf32>
    %c0_69 = arith.constant 0 : index
    %c16_70 = arith.constant 16 : index
    %c9_71 = arith.constant 9 : index
    %71 = vector.load %arg1[%c0_69, %c16_70, %c9_71] : memref<1x32x91xbf16, #tpu.memory_space<vmem>>, vector<1x8x81xbf16>
    %72 = vector.shape_cast %71 : vector<1x8x81xbf16> to vector<8x81xbf16>
    %c12 = arith.constant 12 : index
    %c0_72 = arith.constant 0 : index
    %c0_73 = arith.constant 0 : index
    %73 = vector.load %arg2[%c12, %c0_72, %c0_73] : memref<16x8x8xbf16, #tpu.memory_space<vmem>>, vector<1x8x8xbf16>
    %74 = vector.shape_cast %73 : vector<1x8x8xbf16> to vector<8x8xbf16>
    %cst_74 = arith.constant dense<0.000000e+00> : vector<8x81xf32>
    %75 = tpu.matmul %74, %72, %cst_74 {dimension_numbers = #tpu.dot_dimension_numbers<[1], [0], [0], [1], [0, 0, 1, 1], [], []>} : vector<8x8xbf16>, vector<8x81xbf16>, vector<8x81xf32> -> vector<8x81xf32>
    %76 = arith.addf %70, %75 : vector<8x81xf32>
    %c0_75 = arith.constant 0 : index
    %c24_76 = arith.constant 24 : index
    %c9_77 = arith.constant 9 : index
    %77 = vector.load %arg1[%c0_75, %c24_76, %c9_77] : memref<1x32x91xbf16, #tpu.memory_space<vmem>>, vector<1x8x81xbf16>
    %78 = vector.shape_cast %77 : vector<1x8x81xbf16> to vector<8x81xbf16>
    %c13 = arith.constant 13 : index
    %c0_78 = arith.constant 0 : index
    %c0_79 = arith.constant 0 : index
    %79 = vector.load %arg2[%c13, %c0_78, %c0_79] : memref<16x8x8xbf16, #tpu.memory_space<vmem>>, vector<1x8x8xbf16>
    %80 = vector.shape_cast %79 : vector<1x8x8xbf16> to vector<8x8xbf16>
    %cst_80 = arith.constant dense<0.000000e+00> : vector<8x81xf32>
    %81 = tpu.matmul %80, %78, %cst_80 {dimension_numbers = #tpu.dot_dimension_numbers<[1], [0], [0], [1], [0, 0, 1, 1], [], []>} : vector<8x8xbf16>, vector<8x81xbf16>, vector<8x81xf32> -> vector<8x81xf32>
    %82 = arith.addf %76, %81 : vector<8x81xf32>
    %c0_81 = arith.constant 0 : index
    %c16_82 = arith.constant 16 : index
    %c10_83 = arith.constant 10 : index
    %83 = vector.load %arg1[%c0_81, %c16_82, %c10_83] : memref<1x32x91xbf16, #tpu.memory_space<vmem>>, vector<1x8x81xbf16>
    %84 = vector.shape_cast %83 : vector<1x8x81xbf16> to vector<8x81xbf16>
    %c14 = arith.constant 14 : index
    %c0_84 = arith.constant 0 : index
    %c0_85 = arith.constant 0 : index
    %85 = vector.load %arg2[%c14, %c0_84, %c0_85] : memref<16x8x8xbf16, #tpu.memory_space<vmem>>, vector<1x8x8xbf16>
    %86 = vector.shape_cast %85 : vector<1x8x8xbf16> to vector<8x8xbf16>
    %cst_86 = arith.constant dense<0.000000e+00> : vector<8x81xf32>
    %87 = tpu.matmul %86, %84, %cst_86 {dimension_numbers = #tpu.dot_dimension_numbers<[1], [0], [0], [1], [0, 0, 1, 1], [], []>} : vector<8x8xbf16>, vector<8x81xbf16>, vector<8x81xf32> -> vector<8x81xf32>
    %88 = arith.addf %82, %87 : vector<8x81xf32>
    %c0_87 = arith.constant 0 : index
    %c24_88 = arith.constant 24 : index
    %c10_89 = arith.constant 10 : index
    %89 = vector.load %arg1[%c0_87, %c24_88, %c10_89] : memref<1x32x91xbf16, #tpu.memory_space<vmem>>, vector<1x8x81xbf16>
    %90 = vector.shape_cast %89 : vector<1x8x81xbf16> to vector<8x81xbf16>
    %c15 = arith.constant 15 : index
    %c0_90 = arith.constant 0 : index
    %c0_91 = arith.constant 0 : index
    %91 = vector.load %arg2[%c15, %c0_90, %c0_91] : memref<16x8x8xbf16, #tpu.memory_space<vmem>>, vector<1x8x8xbf16>
    %92 = vector.shape_cast %91 : vector<1x8x8xbf16> to vector<8x8xbf16>
    %cst_92 = arith.constant dense<0.000000e+00> : vector<8x81xf32>
    %93 = tpu.matmul %92, %90, %cst_92 {dimension_numbers = #tpu.dot_dimension_numbers<[1], [0], [0], [1], [0, 0, 1, 1], [], []>} : vector<8x8xbf16>, vector<8x81xbf16>, vector<8x81xf32> -> vector<8x81xf32>
    %94 = arith.addf %88, %93 : vector<8x81xf32>
    %c0_93 = arith.constant 0 : index
    %c0_94 = arith.constant 0 : index
    %95 = vector.load %arg3[%c0_93, %c0_94] : memref<8x1xf32, #tpu.memory_space<vmem>>, vector<8x1xf32>
    %96 = vector.broadcast %95 : vector<8x1xf32> to vector<8x81xf32>
    %97 = arith.addf %94, %96 : vector<8x81xf32>
    %c0_95 = arith.constant 0 : index
    %c0_96 = arith.constant 0 : index
    %c0_97 = arith.constant 0 : index
    %98 = vector.load %arg4[%c0_95, %c0_96, %c0_97] : memref<1x8x81xf32, #tpu.memory_space<vmem>>, vector<1x8x81xf32>
    %99 = vector.shape_cast %98 : vector<1x8x81xf32> to vector<8x81xf32>
    %100 = vector.shape_cast %97 : vector<8x81xf32> to vector<1x8x81xf32>
    tpu.vector_store %arg4[%c0_95, %c0_96, %c0_97], %100 {strides = array<i32>} : memref<1x8x81xf32, #tpu.memory_space<vmem>>, vector<1x8x81xf32>,
    return
  }
  func.func @transform_0(%arg0: i32) -> (i32, i32, i32) {
    %c0_i32 = arith.constant 0 : i32
    %c0_i32_0 = arith.constant 0 : i32
    %c0_i32_1 = arith.constant 0 : i32
    return %arg0, %c0_i32, %c0_i32_0 : i32, i32, i32
  }
  func.func @transform_1(%arg0: i32) -> (i32, i32, i32) {
    %c0_i32 = arith.constant 0 : i32
    %c0_i32_0 = arith.constant 0 : i32
    %c0_i32_1 = arith.constant 0 : i32
    %c0_i32_2 = arith.constant 0 : i32
    return %c0_i32, %c0_i32_0, %c0_i32_1 : i32, i32, i32
  }
  func.func @transform_2(%arg0: i32) -> (i32, i32) {
    %c0_i32 = arith.constant 0 : i32
    %c0_i32_0 = arith.constant 0 : i32
    %c0_i32_1 = arith.constant 0 : i32
    return %c0_i32, %c0_i32_0 : i32, i32
  }
  func.func @transform_3(%arg0: i32) -> (i32, i32, i32) {
    %c0_i32 = arith.constant 0 : i32
    %c0_i32_0 = arith.constant 0 : i32
    %c0_i32_1 = arith.constant 0 : i32
    return %arg0, %c0_i32, %c0_i32_0 : i32, i32, i32
  }
}

</mosaic_0001>

<bundles_post_ra>
// kernel: _lambda_.6
= control target key start
LH: loop header
LB: loop body
LE: loop exit
PB: predicated region body
PF: predicated region fallthrough
CT: control target
= control target key end

     0   :  { %s403_s15 = smov 0   ;;  %s438_s0 = inlined_call_operand.vmem [shape: f32[2,8,324], index: 0, kind: input, shape index: {}]   ;;  %s439_s1 = inlined_call_operand.vmem [shape: f32[8,1], index: 1, kind: input, shape index: {}]   ;;  %s440_s2 = inlined_call_operand.vmem [shape: f32[2,8,1], index: 2, kind: input, shape index: {}]   ;;  %s441_s3 = inlined_call_operand.vmem [shape: f32[1,324], index: 3, kind: input, shape index: {}]   ;;  %s442_s4 = inlined_call_operand.vmem [shape: bf16[2,8,580], index: 4, kind: output, shape index: {}]  }
   0x1 LB: > { %s343_s16 = sadd.s32 4294967295, %s375_s15   ;;  %p347_p0 = scmp.ge.s32.totalorder %s375_s15, 1  ;;  %s375_s15 = sphi %s403_s15, %s14_s15  }
   0x2   : > { %p171_p1 = scmp.lt.s32.totalorder %s375_s15, 3 }
   0x4   : > { %p172_p2 = pnand %p347_p0, %p171_p1 }
   0x5   : > { %v219_v0 = vld [vmem:[%s439_s1] sm:$0xff] (!%p172_p2)  ;;  %p201_p3 = scmp.lt.s32.totalorder (!%p172_p2), %s343_s16, 1  ;;  %v377_v1 = vmov (!%p172_p2), 0   ;;  %vm262_vm0 = vcmask (!%p172_p2), 551936   ;;  %v239_v3 = vlaneseq (!%p172_p2) }
   0x6   : > { %175 = sbr.rel (%p172_p2) target bundleno = 152 (0x98), region = 36  ;;  %368 = vset.pattern.permute.xlu0 (!%p172_p2), %v377_v1  ;;  %v237_v8 = vld [vmem:[%s441_s3] sm:$0x7] (!%p172_p2) }
   0x7   : > { %222 = vperm.xlu0 (!%p172_p2), %368, %v219_v0   ;;  %v240_v4 = vshrl.u32 (!%p172_p2), %v239_v3, 7 }
   0x9   : > { %v241_v5 = vsub.s32 (!%p172_p2), 0, %v240_v4  ;;  %v245_v6 = vsub.s32 (!%p172_p2), 1, %v240_v4  ;;  %v249_v9 = vsub.s32 (!%p172_p2), 2, %v240_v4 }
   0xb   : > { %v242_v13 = vrot.slane (!%p172_p2), %v237_v8, %v241_v5  ;;  %v246_v14 = vrot.slane (!%p172_p2), %v237_v8, %v245_v6  ;;  %v250_v18 = vrot.slane (!%p172_p2), %v237_v8, %v249_v9 }
   0xd   : > { %s444_s16 = smov (!%p201_p3, %s343_s16), 1 }
   0xe   : > { %s349_s19 = sshll.u32 %s444_s16, 3  ;;  %s358_s20 = smul.u32 20, %s444_s16 }
   0xf   : > { %s209_s23 = scalar_lea.vmem %s440_s2, %s349_s19  ;;  %s357_s27 = smul.u32 24, %s444_s16 }
  0x10   : > { %s420_s26 = scalar_lea.vmem %s442_s4, %s358_s20  ;;  %v228_v2 = vld [vmem:[%s209_s23] sm:$0xff] }
  0x11   : > { %260 = vst [vmem:[%s420_s26] sm:$0xff] %v377_v1  ;;  %261 = vst [vmem:[%s420_s26 + $0x8] sm:$0xff] %v377_v1  ;;  %231 = vperm.xlu0 %368, %v228_v2   ;;  %s205_s30 = scalar_lea.vmem %s438_s0, %s357_s27 }
  0x12   : > { %263 = vst.msk [vmem:[%s420_s26 + $0x10] sm:$0xf] %vm262_vm0, %v377_v1  ;;  %v216_v10 = vld [vmem:[%s205_s30] sm:$0xff]  ;;  %v217_v11 = vld [vmem:[%s205_s30 + $0x8] sm:$0xff]  ;;  %v218_v12 = vld [vmem:[%s205_s30 + $0x10] sm:$0xff] }
  0x86   : > { %v223_v7 = vpop.permute.xlu0 %222 }
  0x87   : > { %v225_v15 = vmul.f32 %v223_v7, %v216_v10  ;;  %v226_v16 = vmul.f32 %v223_v7, %v217_v11  ;;  %v227_v17 = vmul.f32 %v223_v7, %v218_v12 }
  0x90   : > { %v232_v19 = vpop.permute.xlu0 %231 }
  0x91   : > { %v234_v20 = vadd.f32 %v232_v19, %v225_v15  ;;  %v235_v21 = vadd.f32 %v232_v19, %v226_v16  ;;  %v236_v22 = vadd.f32 %v232_v19, %v227_v17 }
  0x93   : > { %v254_v23 = vmul.f32 %v242_v13, %v234_v20  ;;  %v255_v24 = vmul.f32 %v246_v14, %v235_v21  ;;  %v256_v25 = vmul.f32 %v250_v18, %v236_v22 }
  0x95   : > { %v355_v26 = vpack.c.bf16 %v255_v24, %v254_v23  ;;  %v356_v27 = vpack.c.bf16 %v256_v25, %v256_v25 }
  0x97   : > { %274 = vst [vmem:[%s420_s26 + $0x4] sm:$0xff] %v355_v26  ;;  %275 = vst.msk [vmem:[%s420_s26 + $0xc] sm:$0xf] %vm262_vm0, %v356_v27 }
  0x98 PF: > { %s14_s15 = sadd.s32 1, %s375_s15  }
  0x99   : > { %p11_p4 = scmp.ge.s32.totalorder %s14_s15, 4  }
  0x9b   :  { %13 = sbr.rel (!%p11_p4) target bundleno = 1 (0x1), region = 69 }

// kernel: _lambda_.8
= control target key start
LH: loop header
LB: loop body
LE: loop exit
PB: predicated region body
PF: predicated region fallthrough
CT: control target
= control target key end

     0   :  { %s399_s15 = smov 0   ;;  %s430_s0 = inlined_call_operand.vmem [shape: f32[2,8,324], index: 0, kind: input, shape index: {}]   ;;  %s431_s1 = inlined_call_operand.vmem [shape: f32[8,1], index: 1, kind: input, shape index: {}]   ;;  %s432_s2 = inlined_call_operand.vmem [shape: f32[2,8,1], index: 2, kind: input, shape index: {}]   ;;  %s433_s3 = inlined_call_operand.vmem [shape: f32[1,324], index: 3, kind: input, shape index: {}]   ;;  %s434_s4 = inlined_call_operand.vmem [shape: bf16[2,8,324], index: 4, kind: output, shape index: {}]  }
   0x1 LB: > { %s339_s16 = sadd.s32 4294967295, %s371_s15   ;;  %p343_p0 = scmp.ge.s32.totalorder %s371_s15, 1  ;;  %s371_s15 = sphi %s399_s15, %s14_s15  }
   0x2   : > { %p171_p1 = scmp.lt.s32.totalorder %s371_s15, 3 }
   0x4   : > { %p172_p2 = pnand %p343_p0, %p171_p1 }
   0x5   : > { %v218_v0 = vld [vmem:[%s431_s1] sm:$0xff] (!%p172_p2)  ;;  %p201_p3 = scmp.lt.s32.totalorder (!%p172_p2), %s339_s16, 1  ;;  %v373_v1 = vmov (!%p172_p2), 0   ;;  %v238_v3 = vlaneseq (!%p172_p2)  ;;  %vm270_vm0 = vcmask (!%p172_p2), 551936  }
   0x6   : > { %175 = sbr.rel (%p172_p2) target bundleno = 152 (0x98), region = 36  ;;  %364 = vset.pattern.permute.xlu0 (!%p172_p2), %v373_v1  ;;  %v236_v8 = vld [vmem:[%s433_s3] sm:$0x7] (!%p172_p2) }
   0x7   : > { %221 = vperm.xlu0 (!%p172_p2), %364, %v218_v0   ;;  %v239_v4 = vshrl.u32 (!%p172_p2), %v238_v3, 7 }
   0x9   : > { %v240_v5 = vsub.s32 (!%p172_p2), 0, %v239_v4  ;;  %v244_v6 = vsub.s32 (!%p172_p2), 1, %v239_v4  ;;  %v248_v9 = vsub.s32 (!%p172_p2), 2, %v239_v4 }
   0xb   : > { %v241_v13 = vrot.slane (!%p172_p2), %v236_v8, %v240_v5  ;;  %v245_v14 = vrot.slane (!%p172_p2), %v236_v8, %v244_v6  ;;  %v249_v18 = vrot.slane (!%p172_p2), %v236_v8, %v248_v9 }
   0xd   : > { %s436_s16 = smov (!%p201_p3, %s339_s16), 1 }
   0xe   : > { %s345_s19 = sshll.u32 %s436_s16, 3  ;;  %s353_s23 = smul.u32 24, %s436_s16 }
   0xf   : > { %s209_s22 = scalar_lea.vmem %s432_s2, %s345_s19  ;;  %s354_s29 = smul.u32 12, %s436_s16 }
  0x10   : > { %v227_v2 = vld [vmem:[%s209_s22] sm:$0xff]  ;;  %s205_s26 = scalar_lea.vmem %s430_s0, %s353_s23 }
  0x11   : > { %230 = vperm.xlu0 %364, %v227_v2   ;;  %v215_v10 = vld [vmem:[%s205_s26] sm:$0xff]  ;;  %v216_v11 = vld [vmem:[%s205_s26 + $0x8] sm:$0xff]  ;;  %v217_v12 = vld [vmem:[%s205_s26 + $0x10] sm:$0xff]  ;;  %s214_s6 = scalar_lea.vmem %s434_s4, %s354_s29 }
  0x86   : > { %v222_v7 = vpop.permute.xlu0 %221 }
  0x87   : > { %v224_v15 = vmul.f32 %v222_v7, %v215_v10  ;;  %v225_v16 = vmul.f32 %v222_v7, %v216_v11  ;;  %v226_v17 = vmul.f32 %v222_v7, %v217_v12 }
  0x90   : > { %v231_v19 = vpop.permute.xlu0 %230 }
  0x91   : > { %v233_v20 = vadd.f32 %v231_v19, %v224_v15  ;;  %v234_v21 = vadd.f32 %v231_v19, %v225_v16  ;;  %v235_v22 = vadd.f32 %v231_v19, %v226_v17 }
  0x93   : > { %v253_v23 = vmul.f32 %v241_v13, %v233_v20  ;;  %v254_v24 = vmul.f32 %v245_v14, %v234_v21  ;;  %v255_v25 = vmul.f32 %v249_v18, %v235_v22 }
  0x95   : > { %v351_v26 = vpack.c.bf16 %v254_v24, %v253_v23  ;;  %v352_v27 = vpack.c.bf16 %v255_v25, %v255_v25 }
  0x97   : > { %269 = vst [vmem:[%s214_s6] sm:$0xff] %v351_v26  ;;  %271 = vst.msk [vmem:[%s214_s6 + $0x8] sm:$0xf] %vm270_vm0, %v352_v27 }
  0x98 PF: > { %s14_s15 = sadd.s32 1, %s371_s15  }
  0x99   : > { %p11_p4 = scmp.ge.s32.totalorder %s14_s15, 4  }
  0x9b   :  { %13 = sbr.rel (!%p11_p4) target bundleno = 1 (0x1), region = 69 }

// kernel: _lambda_.5
= control target key start
LH: loop header
LB: loop body
LE: loop exit
PB: predicated region body
PF: predicated region fallthrough
CT: control target
= control target key end

     0   :  { %s1753_s21 = smov 0   ;;  %s1937_s0 = inlined_call_operand.vmem [shape: bf16[2,4,580], index: 0, kind: input, shape index: {}]   ;;  %s1938_s1 = inlined_call_operand.vmem [shape: bf16[9,8,4], index: 1, kind: input, shape index: {}]   ;;  %s1939_s2 = inlined_call_operand.vmem [shape: f32[8,1], index: 2, kind: input, shape index: {}]   ;;  %s1940_s3 = inlined_call_operand.vmem [shape: f32[1,324], index: 3, kind: input, shape index: {}]   ;;  %s1941_s4 = inlined_call_operand.vmem [shape: f32[2,8,324], index: 4, kind: output, shape index: {0}]   ;;  %s1942_s5 = inlined_call_operand.vmem [shape: f32[2,8,1], index: 5, kind: output, shape index: {1}]   ;;  %s1943_s6 = inlined_call_operand.vmem [shape: f32[2,8,1], index: 6, kind: output, shape index: {2}]  }
   0x1 LB: > { %s1551_s22 = sadd.s32 4294967295, %s1704_s21   ;;  %p1555_p0 = scmp.ge.s32.totalorder %s1704_s21, 1  ;;  %s1704_s21 = sphi %s1753_s21, %s17_s21  }
   0x2   : > { %p217_p1 = scmp.lt.s32.totalorder %s1704_s21, 3 }
   0x4   : > { %p218_p2 = pnand %p1555_p0, %p217_p1 }
   0x5   : > { %p255_p3 = scmp.lt.s32.totalorder (!%p218_p2), %s1551_s22, 1  ;;  %v283_v0 = vlaneseq (!%p218_p2)  ;;  %v1706_v1 = vmov (!%p218_p2), 1983009808   ;;  %v1707_v5 = vmov (!%p218_p2), 0.0   ;;  %v1708_v7 = vmov (!%p218_p2), 0   ;;  %s1710_s27 = smov (!%p218_p2), 18  }
   0x6   : > { %221 = sbr.rel (%p218_p2) target bundleno = 578 (0x242), region = 36  ;;  %v281_v2 = vunpack.c.l.s4 (!%p218_p2), %v1706_v1  ;;  %1615 = vmatprep.subr.bf16.mxu1 (!%p218_p2), %v1707_v5  ;;  %354 = vmatprep.mubr.bf16.mxu0 (!%p218_p2), %v1708_v7  ;;  %vm1709_vm0 = vmmov (!%p218_p2), 0   ;;  %s1711_s28 = smov (!%p218_p2), 19   ;;  %v1382_v38 = vld [vmem:[%s1939_s2] sm:$0xff] (!%p218_p2)  ;;  %vm304_vm1 = vcmask (!%p218_p2), 146432   ;;  %vm312_vm2 = vcmask (!%p218_p2), 1041408  }
   0x7   : > { %v1763_v3 = vshrl.u32 (!%p218_p2), %v283_v0, 7  ;;  %1691 = vset.pattern.permute.xlu0 (!%p218_p2), %v1708_v7  ;;  %1617 = vmatprep.mubr.msk.bf16.mxu1 (!%p218_p2), %vm1709_vm0, %v1707_v5  ;;  %s1712_s29 = smov (!%p218_p2), 17   ;;  %s1713_s30 = smov (!%p218_p2), 1   ;;  %v1560_v47 = vld [vmem:[%s1938_s1 + $0x4] sm:$0xf] (!%p218_p2)  ;;  %vm308_vm3 = vcmask (!%p218_p2), 31744  }
   0x8   : > { %v282_v4 = vunpack.c.0.s8 (!%p218_p2), %v281_v2  ;;  %s1714_s7 = smov (!%p218_p2), 127   ;;  %s1715_s8 = smov (!%p218_p2), 111   ;;  %vm411_vm4 = vcmask (!%p218_p2), 154624   ;;  %v275_v57 = vld [vmem:[%s1938_s1] sm:$0xf] (!%p218_p2)  ;;  %vm537_vm5 = vcmask (!%p218_p2), 138240  }
   0x9   : > { %s1716_s9 = smov (!%p218_p2), 110   ;;  %s1717_s10 = smov (!%p218_p2), 109   ;;  %vm666_vm6 = vcmask (!%p218_p2), 7168   ;;  %vm908_vm7 = vcmask (!%p218_p2), 1039360   ;;  %vm1033_vm8 = vcmask (!%p218_p2), 908288   ;;  %vm1158_vm9 = vcmask (!%p218_p2), 900096  }
   0xa   : > { %v1768_v6 = vsub.s32 (!%p218_p2), %v282_v4, %v1763_v3  ;;  %v1567_v4 = vld [vmem:[%s1938_s1 + $0x8] sm:$0xf] (!%p218_p2)  ;;  %vm1283_vm10 = vcmask (!%p218_p2), 891904   ;;  %vm1416_vm11 = vcmask (!%p218_p2), 556032  }
   0xd   : > { %s1945_s22 = smov (!%p255_p3, %s1551_s22), 1 }
   0xe   : > { %s1669_s23 = smul.u32 10, %s1945_s22  ;;  %s1558_s15 = sshll.u32 %s1945_s22, 3 }
   0xf   : > { %s1670_s11 = smul.u32 24, %s1945_s22  ;;  %s268_s18 = scalar_lea.vmem %s1942_s5, %s1558_s15 }
  0x10   : > { %s1775_s26 = scalar_lea.vmem %s1937_s0, %s1669_s23  ;;  %s272_s23 = scalar_lea.vmem %s1943_s6, %s1558_s15 }
  0x11   : > { %v274_v8 = vld [vmem:[%s1775_s26] sm:$0xff]  ;;  %s264_s14 = scalar_lea.vmem %s1941_s4, %s1670_s11 }
  0x12   : > { %v286_v9 = vrot.slane %v274_v8, %v1768_v6  ;;  %v279_v10 = vcombine.high %v274_v8, %v274_v8  ;;  %v766_v14 = vld [vmem:[%s1775_s26 + $0x2] sm:$0x3f] }
  0x13   : > { %v1784_v15 = vrot.slane %v766_v14, %v1768_v6  ;;  %v770_v16 = vcombine.high %v766_v14, %v766_v14  ;;  %v882_v18 = vld [vmem:[%s1775_s26 + $0x2] sm:$0x3f] }
  0x14   : > { %296 = vrot.lane.b32.xlu0 %v286_v9, %s1710_s27  ;;  %v293_v11 = vrot.slane %v279_v10, %v1768_v6  ;;  %v294_v12 = vcombine.high %v286_v9, %v286_v9  ;;  %v893_v19 = vrot.slane %v882_v18, %v1768_v6  ;;  %v886_v20 = vcombine.high %v882_v18, %v882_v18  ;;  %v1007_v22 = vld [vmem:[%s1775_s26 + $0x2] sm:$0x3f] }
  0x15   : > { %v1787_v17 = vrot.slane %v770_v16, %v1768_v6  ;;  %v1018_v24 = vrot.slane %v1007_v22, %v1768_v6  ;;  %v1011_v25 = vcombine.high %v1007_v22, %v1007_v22  ;;  %v1132_v27 = vld [vmem:[%s1775_s26 + $0x2] sm:$0x3f]  ;;  %v790_v22 = vsel %vm312_vm2, %v1784_v15, 0 }
  0x16   : > { %300 = vrot.lane.b32.xlu1 %v293_v11, %s1710_s27  ;;  %v295_v13 = vcombine.high %v293_v11, %v293_v11  ;;  %v901_v21 = vcombine.high %v893_v19, %v893_v19  ;;  %v900_v23 = vrot.slane %v886_v20, %v1768_v6  ;;  %v1143_v29 = vrot.slane %v1132_v27, %v1768_v6  ;;  %v1257_v32 = vld [vmem:[%s1775_s26 + $0x2] sm:$0x3f] }
  0x17   : > { %v1026_v26 = vcombine.high %v1018_v24, %v1018_v24  ;;  %v1025_v28 = vrot.slane %v1011_v25, %v1768_v6  ;;  %v1136_v30 = vcombine.high %v1132_v27, %v1132_v27  ;;  %v1268_v34 = vrot.slane %v1257_v32, %v1768_v6 }
  0x18   : > { %298 = vrot.lane.b32.xlu0 %v294_v12, %s1710_s27  ;;  %v1151_v31 = vcombine.high %v1143_v29, %v1143_v29  ;;  %v1261_v35 = vcombine.high %v1257_v32, %v1257_v32 }
  0x19   : > { %v1150_v33 = vrot.slane %v1136_v30, %v1768_v6  ;;  %v1276_v36 = vcombine.high %v1268_v34, %v1268_v34 }
  0x1a   : > { %302 = vrot.lane.b32.xlu1 %v295_v13, %s1710_s27  ;;  %v1275_v37 = vrot.slane %v1261_v35, %v1768_v6 }
  0x1c   : > { %403 = vrot.lane.b32.xlu0 %v286_v9, %s1711_s28 }
  0x1e   : > { %405 = vrot.lane.b32.xlu1 %v294_v12, %s1711_s28 }
  0x20   : > { %407 = vrot.lane.b32.xlu0 %v293_v11, %s1711_s28 }
  0x22   : > { %409 = vrot.lane.b32.xlu1 %v295_v13, %s1711_s28 }
  0x24   : > { %529 = vrot.lane.b32.xlu0 %v286_v9, %s1712_s29 }
  0x26   : > { %531 = vrot.lane.b32.xlu1 %v294_v12, %s1712_s29 }
  0x28   : > { %533 = vrot.lane.b32.xlu0 %v293_v11, %s1712_s29 }
  0x2a   : > { %535 = vrot.lane.b32.xlu1 %v295_v13, %s1712_s29 }
  0x2c   : > { %658 = vrot.lane.b32.xlu0 %v286_v9, %s1713_s30 }
  0x2e   : > { %660 = vrot.lane.b32.xlu1 %v294_v12, %s1713_s30  ;;  %v785_v12 = vcombine.high %v1784_v15, %v1784_v15 }
  0x30   : > { %662 = vrot.lane.b32.xlu0 %v293_v11, %s1713_s30 }
  0x32   : > { %664 = vrot.lane.b32.xlu1 %v295_v13, %s1713_s30 }
  0x34   : > { %902 = vrot.lane.b32.xlu0 %v893_v19, %s1714_s7  ;;  %v1571_v19 = vld [vmem:[%s1938_s1 + $0xc] sm:$0xf] }
  0x36   : > { %904 = vrot.lane.b32.xlu1 %v901_v21, %s1714_s7 }
  0x38   : > { %906 = vrot.lane.b32.xlu0 %v900_v23, %s1714_s7 }
  0x3a   : > { %1027 = vrot.lane.b32.xlu1 %v1018_v24, %s1715_s8  ;;  %v796_v24 = vsel %vm312_vm2, %v1787_v17, 0  ;;  %v1575_v17 = vld [vmem:[%s1938_s1 + $0x10] sm:$0xf] }
  0x3c   : > { %1029 = vrot.lane.b32.xlu0 %v1026_v26, %s1715_s8 }
  0x3e   : > { %1031 = vrot.lane.b32.xlu1 %v1025_v28, %s1715_s8 }
  0x40   : > { %1152 = vrot.lane.b32.xlu0 %v1143_v29, %s1716_s9 }
  0x42   : > { %1154 = vrot.lane.b32.xlu1 %v1151_v31, %s1716_s9 }
  0x44   : > { %1156 = vrot.lane.b32.xlu0 %v1150_v33, %s1716_s9 }
  0x46   : > { %1277 = vrot.lane.b32.xlu1 %v1268_v34, %s1717_s10 }
  0x48   : > { %1279 = vrot.lane.b32.xlu0 %v1276_v36, %s1717_s10  ;;  %v1579_v36 = vld [vmem:[%s1938_s1 + $0x14] sm:$0xf] }
  0x4a   : > { %1281 = vrot.lane.b32.xlu1 %v1275_v37, %s1717_s10 }
  0x4c   : > { %1385 = vperm.xlu0 %1691, %v1382_v38  }
  0x86   : > { %v297_v39 = vpop.permute.xlu0 %296 }
  0x88   : > { %v301_v40 = vpop.permute.xlu1 %300 }
  0x8a   : > { %v299_v41 = vpop.permute.xlu0 %298 }
  0x8b   : > { %v306_v42 = vsel %vm304_vm1, %v299_v41, %v301_v40  ;;  %v305_v43 = vsel %vm304_vm1, %v297_v39, %v299_v41 }
  0x8c   : > { %1561 = vmatprep.subr.msk.bf16.mxu0 %vm312_vm2, %v306_v42  ;;  %v303_v44 = vpop.permute.xlu1 %302  ;;  %v314_v45 = vsel %vm312_vm2, %v305_v43, 0 }
  0x8d   : > { %323 = vmatpush1.bf16.msra.mxu0 %v314_v45  ;;  %v307_v46 = vsel %vm304_vm1, %v301_v40, %v303_v44  ;;  %v1583_v45 = vld [vmem:[%s1938_s1 + $0x18] sm:$0xf] }
  0x8e   : > { %v404_v48 = vpop.permute.xlu0 %403  ;;  %v320_v49 = vsel %vm312_vm2, %v307_v46, 0 }
  0x8f   : > { %1616 = vmatpush3.bf16.msra.mxu1 %v320_v49 }
  0x90   : > { %1562 = vmatmul.mubr.msk.bf16.vlgmr.msra.gmra.mrb[0].mxu0 %vm308_vm3, %v1560_v47  ;;  %v406_v50 = vpop.permute.xlu1 %405  ;;  %1621 = vmatprep.subr.bf16.mxu1 %v1707_v5 }
  0x91   : > { %v412_v51 = vsel %vm411_vm4, %v404_v48, %v406_v50  ;;  %459 = vmatprep.mubr.bf16.mxu0 %v1708_v7 }
  0x92   : > { %v408_v52 = vpop.permute.xlu0 %407  ;;  %1618 = vmatmul.mubr.msk.bf16.vlgmr.msra.gmra.mrb[0].mxu1 %vm308_vm3, %v1560_v47  ;;  %v419_v54 = vsel %vm312_vm2, %v412_v51, 0 }
  0x93   : > { %v413_v53 = vsel %vm411_vm4, %v406_v50, %v408_v52  ;;  %1623 = vmatprep.mubr.msk.bf16.mxu1 %vm1709_vm0, %v1707_v5  ;;  %v1587_v50 = vld [vmem:[%s1938_s1 + $0x1c] sm:$0xf] }
  0x94   : > { %1564 = vmatprep.subr.msk.bf16.mxu0 %vm312_vm2, %v413_v53  ;;  %v410_v55 = vpop.permute.xlu1 %409  ;;  %v1591_v53 = vld [vmem:[%s1938_s1 + $0x20] sm:$0xf] }
  0x95   : > { %v414_v56 = vsel %vm411_vm4, %v408_v52, %v410_v55  ;;  %428 = vmatpush1.bf16.msra.mxu0 %v419_v54 }
  0x96   : > { %v425_v58 = vsel %vm312_vm2, %v414_v56, 0  ;;  %v530_v59 = vpop.permute.xlu0 %529 }
  0x97   : > { %1622 = vmatpush3.bf16.msra.mxu1 %v425_v58 }
  0x98   : > { %1565 = vmatmul.mubr.msk.bf16.vlgmr.msra.gmra.mrb[4].mxu0 %vm308_vm3, %v275_v57  ;;  %v532_v60 = vpop.permute.xlu1 %531  ;;  %1627 = vmatprep.subr.bf16.mxu1 %v1707_v5 }
  0x99   : > { %v538_v61 = vsel %vm537_vm5, %v530_v59, %v532_v60  ;;  %585 = vmatprep.mubr.bf16.mxu0 %v1708_v7 }
  0x9a   : > { %v534_v62 = vpop.permute.xlu0 %533  ;;  %1624 = vmatmul.mubr.msk.bf16.vlgmr.msra.gmra.mrb[4].mxu1 %vm308_vm3, %v275_v57  ;;  %v545_v0 = vsel %vm312_vm2, %v538_v61, 0 }
  0x9b   : > { %v539_v63 = vsel %vm537_vm5, %v532_v60, %v534_v62  ;;  %1629 = vmatprep.mubr.msk.bf16.mxu1 %vm1709_vm0, %v1707_v5 }
  0x9c   : > { %1568 = vmatprep.subr.msk.bf16.mxu0 %vm312_vm2, %v539_v63  ;;  %v536_v1 = vpop.permute.xlu1 %535 }
  0x9d   : > { %v540_v2 = vsel %vm537_vm5, %v534_v62, %v536_v1  ;;  %554 = vmatpush1.bf16.msra.mxu0 %v545_v0 }
  0x9e   : > { %v551_v6 = vsel %vm312_vm2, %v540_v2, 0  ;;  %v659_v8 = vpop.permute.xlu0 %658 }
  0x9f   : > { %1628 = vmatpush3.bf16.msra.mxu1 %v551_v6 }
  0xa0   : > { %1569 = vmatmul.mubr.msk.bf16.vlgmr.msra.gmra.mrb[8].mxu0 %vm308_vm3, %v1567_v4  ;;  %v661_v9 = vpop.permute.xlu1 %660  ;;  %1633 = vmatprep.subr.bf16.mxu1 %v1707_v5 }
  0xa1   : > { %v667_v10 = vsel %vm666_vm6, %v659_v8, %v661_v9  ;;  %714 = vmatprep.mubr.bf16.mxu0 %v1708_v7 }
  0xa2   : > { %v663_v11 = vpop.permute.xlu0 %662  ;;  %1630 = vmatmul.mubr.msk.bf16.vlgmr.msra.gmra.mrb[8].mxu1 %vm308_vm3, %v1567_v4  ;;  %v674_v14 = vsel %vm312_vm2, %v667_v10, 0 }
  0xa3   : > { %v668_v13 = vsel %vm666_vm6, %v661_v9, %v663_v11  ;;  %1635 = vmatprep.mubr.msk.bf16.mxu1 %vm1709_vm0, %v1707_v5 }
  0xa4   : > { %1572 = vmatprep.subr.msk.bf16.mxu0 %vm312_vm2, %v668_v13  ;;  %v665_v16 = vpop.permute.xlu1 %664 }
  0xa5   : > { %v669_v18 = vsel %vm666_vm6, %v663_v11, %v665_v16  ;;  %683 = vmatpush1.bf16.msra.mxu0 %v674_v14 }
  0xa6   : > { %v680_v20 = vsel %vm312_vm2, %v669_v18, 0  ;;  %v903_v21 = vpop.permute.xlu0 %902  ;;  %1576 = vmatprep.subr.msk.bf16.mxu0 %vm312_vm2, %v785_v12 }
  0xa7   : > { %1634 = vmatpush3.bf16.msra.mxu1 %v680_v20 }
  0xa8   : > { %1573 = vmatmul.mubr.msk.bf16.vlgmr.msra.gmra.mrb[12].mxu0 %vm308_vm3, %v1571_v19  ;;  %1639 = vmatprep.subr.bf16.mxu1 %v1707_v5  ;;  %v905_v23 = vpop.permute.xlu1 %904 }
  0xa9   : > { %799 = vmatpush1.bf16.msra.mxu0 %v790_v22  ;;  %830 = vmatprep.mubr.bf16.mxu0 %v1708_v7  ;;  %v909_v26 = vsel %vm908_vm7, %v903_v21, %v905_v23 }
  0xaa   : > { %1636 = vmatmul.mubr.msk.bf16.vlgmr.msra.gmra.mrb[12].mxu1 %vm308_vm3, %v1571_v19  ;;  %v907_v25 = vpop.permute.xlu0 %906  ;;  %v915_v28 = vsel %vm312_vm2, %v909_v26, 0 }
  0xab   : > { %v910_v27 = vsel %vm908_vm7, %v905_v23, %v907_v25  ;;  %1640 = vmatpush3.bf16.msra.mxu1 %v796_v24  ;;  %1641 = vmatprep.mubr.msk.bf16.mxu1 %vm1709_vm0, %v1707_v5  ;;  %v921_v30 = vsel %vm312_vm2, %v907_v25, 0 }
  0xac   : > { %1580 = vmatprep.subr.msk.bf16.mxu0 %vm312_vm2, %v910_v27  ;;  %v1028_v15 = vpop.permute.xlu1 %1027  ;;  %1645 = vmatprep.subr.bf16.mxu1 %v1707_v5 }
  0xae   : > { %v1030_v29 = vpop.permute.xlu0 %1029 }
  0xaf   : > { %v1034_v34 = vsel %vm1033_vm8, %v1028_v15, %v1030_v29 }
  0xb0   : > { %1577 = vmatmul.mubr.msk.bf16.vlgmr.msra.gmra.mrb[16].mxu0 %vm308_vm3, %v1575_v17  ;;  %v1032_v31 = vpop.permute.xlu1 %1031  ;;  %v1040_v37 = vsel %vm312_vm2, %v1034_v34, 0 }
  0xb1   : > { %924 = vmatpush1.bf16.msra.mxu0 %v915_v28  ;;  %v1035_v32 = vsel %vm1033_vm8, %v1030_v29, %v1032_v31  ;;  %955 = vmatprep.mubr.bf16.mxu0 %v1708_v7  ;;  %v1046_v40 = vsel %vm312_vm2, %v1032_v31, 0 }
  0xb2   : > { %1642 = vmatmul.mubr.msk.bf16.vlgmr.msra.gmra.mrb[16].mxu1 %vm308_vm3, %v1575_v17  ;;  %1584 = vmatprep.subr.msk.bf16.mxu0 %vm312_vm2, %v1035_v32  ;;  %v1153_v33 = vpop.permute.xlu0 %1152 }
  0xb3   : > { %1646 = vmatpush3.bf16.msra.mxu1 %v921_v30  ;;  %1647 = vmatprep.mubr.msk.bf16.mxu1 %vm1709_vm0, %v1707_v5 }
  0xb4   : > { %1651 = vmatprep.subr.bf16.mxu1 %v1707_v5  ;;  %v1155_v35 = vpop.permute.xlu1 %1154 }
  0xb5   : > { %v1159_v42 = vsel %vm1158_vm9, %v1153_v33, %v1155_v35 }
  0xb6   : > { %v1157_v38 = vpop.permute.xlu0 %1156  ;;  %v1165_v46 = vsel %vm312_vm2, %v1159_v42, 0 }
  0xb7   : > { %v1160_v39 = vsel %vm1158_vm9, %v1155_v35, %v1157_v38  ;;  %v1171_v48 = vsel %vm312_vm2, %v1157_v38, 0 }
  0xb8   : > { %1581 = vmatmul.mubr.msk.bf16.vlgmr.msra.gmra.mrb[20].mxu0 %vm308_vm3, %v1579_v36  ;;  %v1278_v41 = vpop.permute.xlu1 %1277 }
  0xb9   : > { %1049 = vmatpush1.bf16.msra.mxu0 %v1040_v37  ;;  %1080 = vmatprep.mubr.bf16.mxu0 %v1708_v7 }
  0xba   : > { %1648 = vmatmul.mubr.msk.bf16.vlgmr.msra.gmra.mrb[20].mxu1 %vm308_vm3, %v1579_v36  ;;  %1588 = vmatprep.subr.msk.bf16.mxu0 %vm312_vm2, %v1160_v39  ;;  %v1280_v43 = vpop.permute.xlu0 %1279 }
  0xbb   : > { %1652 = vmatpush3.bf16.msra.mxu1 %v1046_v40  ;;  %1653 = vmatprep.mubr.msk.bf16.mxu1 %vm1709_vm0, %v1707_v5  ;;  %v1284_v49 = vsel %vm1283_vm10, %v1278_v41, %v1280_v43 }
  0xbc   : > { %1657 = vmatprep.subr.bf16.mxu1 %v1707_v5  ;;  %v1282_v44 = vpop.permute.xlu1 %1281  ;;  %v1290_v51 = vsel %vm312_vm2, %v1284_v49, 0 }
  0xbd   : > { %v1285_v47 = vsel %vm1283_vm10, %v1280_v43, %v1282_v44  ;;  %v1296_v52 = vsel %vm312_vm2, %v1282_v44, 0 }
  0xc0   : > { %1585 = vmatmul.mubr.msk.bf16.vlgmr.msra.gmra.mrb[24].mxu0 %vm308_vm3, %v1583_v45 }
  0xc1   : > { %1174 = vmatpush1.bf16.msra.mxu0 %v1165_v46  ;;  %1205 = vmatprep.mubr.bf16.mxu0 %v1708_v7 }
  0xc2   : > { %1654 = vmatmul.mubr.msk.bf16.vlgmr.msra.gmra.mrb[24].mxu1 %vm308_vm3, %v1583_v45  ;;  %1592 = vmatprep.subr.msk.bf16.mxu0 %vm312_vm2, %v1285_v47 }
  0xc3   : > { %1658 = vmatpush3.bf16.msra.mxu1 %v1171_v48  ;;  %1659 = vmatprep.mubr.msk.bf16.mxu1 %vm1709_vm0, %v1707_v5 }
  0xc4   : > { %1663 = vmatprep.subr.bf16.mxu1 %v1707_v5 }
  0xc8   : > { %1589 = vmatmul.mubr.msk.bf16.vlgmr.msra.gmra.mrb[28].mxu0 %vm308_vm3, %v1587_v50 }
  0xc9   : > { %1299 = vmatpush1.bf16.msra.mxu0 %v1290_v51  ;;  %1330 = vmatprep.mubr.bf16.mxu0 %v1708_v7 }
  0xca   : > { %1660 = vmatmul.mubr.msk.bf16.vlgmr.msra.gmra.mrb[28].mxu1 %vm308_vm3, %v1587_v50 }
  0xcb   : > { %1664 = vmatpush3.bf16.msra.mxu1 %v1296_v52  ;;  %1665 = vmatprep.mubr.msk.bf16.mxu1 %vm1709_vm0, %v1707_v5 }
  0xd0   : > { %1593 = vmatmul.mubr.msk.bf16.vlgmr.msra.gmra.mrb[32].mxu0 %vm308_vm3, %v1591_v53 }
  0xd2   : > { %1666 = vmatmul.mubr.msk.bf16.vlgmr.msra.gmra.mrb[32].mxu1 %vm308_vm3, %v1591_v53 }
 0x163   : > { %v356_v54 = vpop.f32.mrb[0].mxu0 }
 0x164   : > { %v358_v55 = vpop.f32.mrb[1].mxu0 }
 0x165   : > { %v360_v56 = vpop.f32.mrb[2].mxu0  ;;  %v397_v57 = vpop.f32.mrb[0].mxu1 }
 0x166   : > { %v361_v58 = vpop.f32.mrb[3].mxu0  ;;  %v1619_v7 = vpop.f32.mrb[1].mxu1 }
 0x167   : > { %v400_v59 = vpop.f32.mrb[2].mxu1 }
 0x168   : > { %v1620_v60 = vpop.f32.mrb[3].mxu1 }
 0x16b   : > { %v461_v61 = vpop.f32.mrb[4].mxu0 }
 0x16c   : > { %v462_v62 = vadd.f32 %v461_v61, %v356_v54  ;;  %v463_v63 = vpop.f32.mrb[5].mxu0 }
 0x16d   : > { %v464_v5 = vadd.f32 %v463_v63, %v358_v55  ;;  %v502_v0 = vpop.f32.mrb[4].mxu1  ;;  %v465_v1 = vpop.f32.mrb[6].mxu0 }
 0x16e   : > { %v503_v2 = vadd.f32 %v502_v0, %v397_v57  ;;  %v466_v4 = vpop.f32.mrb[7].mxu0  ;;  %v1625_v6 = vpop.f32.mrb[5].mxu1 }
 0x16f   : > { %v505_v8 = vpop.f32.mrb[6].mxu1 }
 0x170   : > { %v1626_v9 = vpop.f32.mrb[7].mxu1 }
 0x173   : > { %v587_v10 = vpop.f32.mrb[8].mxu0 }
 0x174   : > { %v634_v11 = vadd.f32 %v587_v10, %v462_v62  ;;  %v589_v12 = vpop.f32.mrb[9].mxu0 }
 0x175   : > { %v635_v13 = vadd.f32 %v589_v12, %v464_v5  ;;  %v628_v14 = vpop.f32.mrb[8].mxu1  ;;  %v591_v16 = vpop.f32.mrb[10].mxu0 }
 0x176   : > { %v636_v18 = vadd.f32 %v628_v14, %v503_v2  ;;  %v592_v19 = vpop.f32.mrb[11].mxu0  ;;  %v1631_v20 = vpop.f32.mrb[9].mxu1  ;;  %v1394_v16 = vld [vmem:[%s1940_s3] sm:$0x7] }
 0x177   : > { %v631_v21 = vpop.f32.mrb[10].mxu1  ;;  %v1386_v19 = vpop.permute.xlu0 %1385 }
 0x178   : > { %v1632_v22 = vpop.f32.mrb[11].mxu1 }
 0x179   : > { %v1406_v22 = vsub.s32 2, %v1763_v3 }
 0x17b   : > { %v716_v23 = vpop.f32.mrb[12].mxu0 }
 0x17c   : > { %v763_v24 = vadd.f32 %v716_v23, %v634_v11  ;;  %v718_v25 = vpop.f32.mrb[13].mxu0 }
 0x17d   : > { %v764_v26 = vadd.f32 %v718_v25, %v635_v13  ;;  %v757_v27 = vpop.f32.mrb[12].mxu1  ;;  %v720_v15 = vpop.f32.mrb[14].mxu0  ;;  %v1398_v13 = vsub.s32 0, %v1763_v3 }
 0x17e   : > { %v765_v17 = vadd.f32 %v757_v27, %v636_v18  ;;  %v721_v28 = vpop.f32.mrb[15].mxu0  ;;  %v1637_v29 = vpop.f32.mrb[13].mxu1  ;;  %v1402_v18 = vsub.s32 1, %v1763_v3 }
 0x17f   : > { %v760_v30 = vpop.f32.mrb[14].mxu1 }
 0x180   : > { %v1638_v31 = vpop.f32.mrb[15].mxu1  ;;  %v1403_v29 = vrot.slane %v1394_v16, %v1402_v18 }
 0x183   : > { %v832_v32 = vpop.f32.mrb[16].mxu0 }
 0x184   : > { %v879_v33 = vadd.f32 %v832_v32, %v763_v24  ;;  %v834_v34 = vpop.f32.mrb[17].mxu0 }
 0x185   : > { %v880_v35 = vadd.f32 %v834_v34, %v764_v26  ;;  %v873_v36 = vpop.f32.mrb[16].mxu1  ;;  %v836_v37 = vpop.f32.mrb[18].mxu0  ;;  %v1399_v26 = vrot.slane %v1394_v16, %v1398_v13  ;;  %v1407_v34 = vrot.slane %v1394_v16, %v1406_v22 }
 0x186   : > { %v881_v38 = vadd.f32 %v873_v36, %v765_v17  ;;  %v837_v39 = vpop.f32.mrb[19].mxu0  ;;  %v1643_v40 = vpop.f32.mrb[17].mxu1 }
 0x187   : > { %v876_v41 = vpop.f32.mrb[18].mxu1 }
 0x188   : > { %v1644_v42 = vpop.f32.mrb[19].mxu1 }
 0x18b   : > { %v957_v43 = vpop.f32.mrb[20].mxu0 }
 0x18c   : > { %v1004_v44 = vadd.f32 %v957_v43, %v879_v33  ;;  %v959_v45 = vpop.f32.mrb[21].mxu0 }
 0x18d   : > { %v1005_v46 = vadd.f32 %v959_v45, %v880_v35  ;;  %v998_v47 = vpop.f32.mrb[20].mxu1  ;;  %v961_v48 = vpop.f32.mrb[22].mxu0 }
 0x18e   : > { %v1006_v49 = vadd.f32 %v998_v47, %v881_v38  ;;  %v962_v50 = vpop.f32.mrb[23].mxu0  ;;  %v1649_v51 = vpop.f32.mrb[21].mxu1 }
 0x18f   : > { %v1001_v52 = vpop.f32.mrb[22].mxu1 }
 0x190   : > { %v1650_v53 = vpop.f32.mrb[23].mxu1 }
 0x193   : > { %v1082_v54 = vpop.f32.mrb[24].mxu0 }
 0x194   : > { %v1129_v55 = vadd.f32 %v1082_v54, %v1004_v44  ;;  %v1084_v56 = vpop.f32.mrb[25].mxu0 }
 0x195   : > { %v1130_v57 = vadd.f32 %v1084_v56, %v1005_v46  ;;  %v1123_v58 = vpop.f32.mrb[24].mxu1  ;;  %v1086_v7 = vpop.f32.mrb[26].mxu0 }
 0x196   : > { %v1131_v59 = vadd.f32 %v1123_v58, %v1006_v49  ;;  %v1087_v60 = vpop.f32.mrb[27].mxu0  ;;  %v1655_v61 = vpop.f32.mrb[25].mxu1 }
 0x197   : > { %v1126_v62 = vpop.f32.mrb[26].mxu1 }
 0x198   : > { %v1656_v63 = vpop.f32.mrb[27].mxu1 }
 0x19b   : > { %v1207_v5 = vpop.f32.mrb[28].mxu0 }
 0x19c   : > { %v1254_v0 = vadd.f32 %v1207_v5, %v1129_v55  ;;  %v1209_v1 = vpop.f32.mrb[29].mxu0 }
 0x19d   : > { %v1255_v2 = vadd.f32 %v1209_v1, %v1130_v57  ;;  %v1248_v4 = vpop.f32.mrb[28].mxu1  ;;  %v1211_v6 = vpop.f32.mrb[30].mxu0 }
 0x19e   : > { %v1256_v8 = vadd.f32 %v1248_v4, %v1131_v59  ;;  %v1212_v9 = vpop.f32.mrb[31].mxu0  ;;  %v1661_v10 = vpop.f32.mrb[29].mxu1 }
 0x19f   : > { %v1251_v11 = vpop.f32.mrb[30].mxu1 }
 0x1a0   : > { %v1662_v12 = vpop.f32.mrb[31].mxu1 }
 0x1a3   : > { %v1332_v14 = vpop.f32.mrb[32].mxu0 }
 0x1a4   : > { %v1379_v20 = vadd.f32 %v1332_v14, %v1254_v0  ;;  %v1334_v21 = vpop.f32.mrb[33].mxu0 }
 0x1a5   : > { %v1380_v23 = vadd.f32 %v1334_v21, %v1255_v2  ;;  %v1373_v24 = vpop.f32.mrb[32].mxu1  ;;  %v1336_v25 = vpop.f32.mrb[34].mxu0 }
 0x1a6   : > { %v1388_v27 = vadd.f32 %v1386_v19, %v1379_v20  ;;  %v1381_v15 = vadd.f32 %v1373_v24, %v1256_v8  ;;  %v1337_v17 = vpop.f32.mrb[35].mxu0  ;;  %v1667_v28 = vpop.f32.mrb[33].mxu1 }
 0x1a7   : > { %v1389_v30 = vadd.f32 %v1386_v19, %v1380_v23  ;;  %v1376_v31 = vpop.f32.mrb[34].mxu1 }
 0x1a8   : > { %v1391_v32 = vmax.f32 %v1388_v27, 0.0  ;;  %v1390_v33 = vadd.f32 %v1386_v19, %v1381_v15  ;;  %v1668_v35 = vpop.f32.mrb[35].mxu1 }
 0x1a9   : > { %v1392_v36 = vmax.f32 %v1389_v30, 0.0 }
 0x1aa   : > { %v1411_v3 = vmul.f32 %v1399_v26, %v1391_v32  ;;  %v1393_v37 = vmax.f32 %v1390_v33, 0.0 }
 0x1ab   : > { %v1412_v38 = vmul.f32 %v1403_v29, %v1392_v36 }
 0x1ac   : > { %v1413_v39 = vmul.f32 %v1407_v34, %v1393_v37  ;;  %1414 = vst [vmem:[%s264_s14] sm:$0xff] %v1411_v3  ;;  %v1425_v40 = vmul.f32 %v1411_v3, %v1411_v3 }
 0x1ad   : > { %v1418_v41 = vadd.f32 %v1412_v38, %v1411_v3  ;;  %1415 = vst [vmem:[%s264_s14 + $0x8] sm:$0xff] %v1412_v38  ;;  %v1426_v42 = vmul.f32 %v1412_v38, %v1412_v38 }
 0x1ae   : > { %1417 = vst.msk [vmem:[%s264_s14 + $0x10] sm:$0xff] %vm1416_vm11, %v1413_v39  ;;  %v1419_v43 = vsel %vm1416_vm11, %v1413_v39, 0.0  ;;  %v1427_v44 = vmul.f32 %v1413_v39, %v1413_v39 }
 0x1af   : > { %v1420_v45 = vadd.f32 %v1419_v43, %v1418_v41  ;;  %v1428_v46 = vadd.f32 %v1426_v42, %v1425_v40 }
 0x1b0   : > { %v1429_v47 = vsel %vm1416_vm11, %v1427_v44, 0.0 }
 0x1b1   : > { %1421 = vadd.xlane.f32.xlu1 %v1420_v45  ;;  %v1430_v48 = vadd.f32 %v1429_v47, %v1428_v46 }
 0x1b3   : > { %1431 = vadd.xlane.f32.xlu0 %v1430_v48 }
 0x23e   : > { %v1422_v49 = vpop.xlane.xlu1 %1421 }
 0x23f   : > { %1424 = vst.msk [vmem:[%s268_s18] sm:$0xff] %vm666_vm6, %v1422_v49 }
 0x240   : > { %v1432_v50 = vpop.xlane.xlu0 %1431 }
 0x241   : > { %1433 = vst.msk [vmem:[%s272_s23] sm:$0xff] %vm666_vm6, %v1432_v50 }
 0x242 PF: > { %s17_s21 = sadd.s32 1, %s1704_s21  }
 0x243   : > { %p14_p4 = scmp.ge.s32.totalorder %s17_s21, 4  }
 0x245   :  { %16 = sbr.rel (!%p14_p4) target bundleno = 1 (0x1), region = 98 }

// kernel: _lambda_.7
= control target key start
LH: loop header
LB: loop body
LE: loop exit
PB: predicated region body
PF: predicated region fallthrough
CT: control target
= control target key end

     0   :  { %s1634_s21 = smov 0   ;;  %s1809_s0 = inlined_call_operand.vmem [shape: bf16[2,8,580], index: 0, kind: input, shape index: {}]   ;;  %s1810_s1 = inlined_call_operand.vmem [shape: bf16[9,8,8], index: 1, kind: input, shape index: {}]   ;;  %s1811_s2 = inlined_call_operand.vmem [shape: f32[8,1], index: 2, kind: input, shape index: {}]   ;;  %s1812_s3 = inlined_call_operand.vmem [shape: f32[1,324], index: 3, kind: input, shape index: {}]   ;;  %s1813_s4 = inlined_call_operand.vmem [shape: f32[2,8,324], index: 4, kind: output, shape index: {0}]   ;;  %s1814_s5 = inlined_call_operand.vmem [shape: f32[2,8,1], index: 5, kind: output, shape index: {1}]   ;;  %s1815_s6 = inlined_call_operand.vmem [shape: f32[2,8,1], index: 6, kind: output, shape index: {2}]  }
   0x1 LB: > { %s1426_s22 = sadd.s32 4294967295, %s1586_s21   ;;  %p1430_p0 = scmp.ge.s32.totalorder %s1586_s21, 1  ;;  %s1586_s21 = sphi %s1634_s21, %s17_s21  }
   0x2   : > { %p217_p1 = scmp.lt.s32.totalorder %s1586_s21, 3 }
   0x4   : > { %p218_p2 = pnand %p1430_p0, %p217_p1 }
   0x5   : > { %p255_p3 = scmp.lt.s32.totalorder (!%p218_p2), %s1426_s22, 1  ;;  %v1588_v0 = vmov (!%p218_p2), 0.0   ;;  %v1589_v1 = vmov (!%p218_p2), 0   ;;  %vm1590_vm0 = vmmov (!%p218_p2), 0   ;;  %s1591_s27 = smov (!%p218_p2), 18   ;;  %v1257_v12 = vld [vmem:[%s1811_s2] sm:$0xff] (!%p218_p2) }
   0x6   : > { %221 = sbr.rel (%p218_p2) target bundleno = 578 (0x242), region = 36  ;;  %1497 = vmatprep.subr.bf16.mxu1 (!%p218_p2), %v1588_v0  ;;  %347 = vmatprep.mubr.bf16.mxu0 (!%p218_p2), %v1589_v1  ;;  %s1592_s28 = smov (!%p218_p2), 19   ;;  %vm297_vm1 = vcmask (!%p218_p2), 146432   ;;  %vm305_vm2 = vcmask (!%p218_p2), 1043456   ;;  %v1435_v22 = vld [vmem:[%s1810_s1 + $0x4] sm:$0xf] (!%p218_p2) }
   0x7   : > { %1499 = vmatprep.mubr.msk.bf16.mxu1 (!%p218_p2), %vm1590_vm0, %v1588_v0  ;;  %1572 = vset.pattern.permute.xlu0 (!%p218_p2), %v1589_v1  ;;  %s1593_s29 = smov (!%p218_p2), 17   ;;  %s1594_s30 = smov (!%p218_p2), 1   ;;  %vm301_vm3 = vcmask (!%p218_p2), 64512   ;;  %vm404_vm4 = vcmask (!%p218_p2), 154624   ;;  %v276_v32 = vld [vmem:[%s1810_s1] sm:$0xf] (!%p218_p2) }
   0x8   : > { %s1595_s7 = smov (!%p218_p2), 127   ;;  %s1596_s8 = smov (!%p218_p2), 111   ;;  %vm511_vm5 = vcmask (!%p218_p2), 138240   ;;  %v1446_v42 = vld [vmem:[%s1810_s1 + $0x8] sm:$0xf] (!%p218_p2)  ;;  %vm621_vm6 = vcmask (!%p218_p2), 7168  }
   0x9   : > { %s1597_s9 = smov (!%p218_p2), 110   ;;  %s1598_s10 = smov (!%p218_p2), 109   ;;  %v1450_v52 = vld [vmem:[%s1810_s1 + $0xc] sm:$0xf] (!%p218_p2)  ;;  %vm837_vm7 = vcmask (!%p218_p2), 1039360   ;;  %vm944_vm8 = vcmask (!%p218_p2), 908288  }
   0xa   : > { %v1454_v61 = vld [vmem:[%s1810_s1 + $0x10] sm:$0xf] (!%p218_p2)  ;;  %vm1051_vm9 = vcmask (!%p218_p2), 900096   ;;  %vm1158_vm10 = vcmask (!%p218_p2), 891904   ;;  %vm1291_vm11 = vcmask (!%p218_p2), 556032  }
   0xd   : > { %s1817_s22 = smov (!%p255_p3, %s1426_s22), 1 }
   0xe   : > { %s1551_s23 = smul.u32 20, %s1817_s22  ;;  %s1433_s15 = sshll.u32 %s1817_s22, 3 }
   0xf   : > { %s1552_s11 = smul.u32 24, %s1817_s22  ;;  %s268_s18 = scalar_lea.vmem %s1814_s5, %s1433_s15 }
  0x10   : > { %s1652_s26 = scalar_lea.vmem %s1809_s0, %s1551_s23  ;;  %s272_s23 = scalar_lea.vmem %s1815_s6, %s1433_s15 }
  0x11   : > { %v275_v2 = vld [vmem:[%s1652_s26 + $0x8] sm:$0xff]  ;;  %v274_v3 = vld [vmem:[%s1652_s26] sm:$0xff]  ;;  %s264_s14 = scalar_lea.vmem %s1813_s4, %s1552_s11 }
  0x12   : > { %v1438_v4 = vcombine.low %v275_v2, %v275_v2  ;;  %v1436_v5 = vcombine.low %v274_v3, %v274_v3  ;;  %v1439_v6 = vcombine.high %v275_v2, %v275_v2  ;;  %v1437_v7 = vcombine.high %v274_v3, %v274_v3  ;;  %v721_v8 = vld [vmem:[%s1652_s26 + $0x4] sm:$0xff]  ;;  %v1665_v11 = vld [vmem:[%s1652_s26 + $0xc] ss:$0 sps:$4 sm:$0xff]  }
  0x13   : > { %v1658_v9 = vcombine.low %v721_v8, %v721_v8  ;;  %v1660_v10 = vcombine.high %v721_v8, %v721_v8  ;;  %v743_v55 = vsel %vm305_vm2, %v1665_v11, 0  ;;  %v1461_v8 = vld [vmem:[%s1810_s1 + $0x14] sm:$0xf] }
  0x14   : > { %293 = vrot.lane.b32.xlu1 %v1438_v4, %s1591_s27  ;;  %289 = vrot.lane.b32.xlu0 %v1436_v5, %s1591_s27 }
  0x15   : > { %v737_v54 = vsel %vm305_vm2, %v1658_v9, 0 }
  0x18   : > { %295 = vrot.lane.b32.xlu1 %v1439_v6, %s1591_s27  ;;  %291 = vrot.lane.b32.xlu0 %v1437_v7, %s1591_s27 }
  0x1c   : > { %398 = vrot.lane.b32.xlu1 %v1437_v7, %s1592_s28  ;;  %396 = vrot.lane.b32.xlu0 %v1436_v5, %s1592_s28 }
  0x20   : > { %402 = vrot.lane.b32.xlu1 %v1439_v6, %s1592_s28  ;;  %400 = vrot.lane.b32.xlu0 %v1438_v4, %s1592_s28 }
  0x24   : > { %505 = vrot.lane.b32.xlu1 %v1437_v7, %s1593_s29  ;;  %503 = vrot.lane.b32.xlu0 %v1436_v5, %s1593_s29 }
  0x28   : > { %509 = vrot.lane.b32.xlu1 %v1439_v6, %s1593_s29  ;;  %507 = vrot.lane.b32.xlu0 %v1438_v4, %s1593_s29 }
  0x2c   : > { %615 = vrot.lane.b32.xlu1 %v1437_v7, %s1594_s30  ;;  %613 = vrot.lane.b32.xlu0 %v1436_v5, %s1594_s30 }
  0x30   : > { %619 = vrot.lane.b32.xlu1 %v1439_v6, %s1594_s30  ;;  %617 = vrot.lane.b32.xlu0 %v1438_v4, %s1594_s30 }
  0x34   : > { %831 = vrot.lane.b32.xlu0 %v1658_v9, %s1595_s7  ;;  %833 = vrot.lane.b32.xlu1 %v1660_v10, %s1595_s7 }
  0x38   : > { %835 = vrot.lane.b32.xlu0 %v1665_v11, %s1595_s7  ;;  %938 = vrot.lane.b32.xlu1 %v1658_v9, %s1596_s8 }
  0x3c   : > { %942 = vrot.lane.b32.xlu1 %v1665_v11, %s1596_s8  ;;  %940 = vrot.lane.b32.xlu0 %v1660_v10, %s1596_s8 }
  0x40   : > { %1045 = vrot.lane.b32.xlu0 %v1658_v9, %s1597_s9  ;;  %1047 = vrot.lane.b32.xlu1 %v1660_v10, %s1597_s9 }
  0x44   : > { %1049 = vrot.lane.b32.xlu0 %v1665_v11, %s1597_s9  ;;  %1152 = vrot.lane.b32.xlu1 %v1658_v9, %s1598_s10 }
  0x48   : > { %1156 = vrot.lane.b32.xlu1 %v1665_v11, %s1598_s10  ;;  %1154 = vrot.lane.b32.xlu0 %v1660_v10, %s1598_s10 }
  0x4c   : > { %1260 = vperm.xlu0 %1572, %v1257_v12  }
  0x86   : > { %v294_v13 = vpop.permute.xlu1 %293  ;;  %v290_v14 = vpop.permute.xlu0 %289 }
  0x8a   : > { %v296_v15 = vpop.permute.xlu1 %295  ;;  %v292_v16 = vpop.permute.xlu0 %291 }
  0x8b   : > { %v299_v17 = vsel %vm297_vm1, %v292_v16, %v294_v13  ;;  %v298_v18 = vsel %vm297_vm1, %v290_v14, %v292_v16  ;;  %v300_v19 = vsel %vm297_vm1, %v294_v13, %v296_v15  ;;  %v1465_v15 = vld [vmem:[%s1810_s1 + $0x18] sm:$0xf] }
  0x8c   : > { %1440 = vmatprep.subr.msk.bf16.mxu0 %vm305_vm2, %v299_v17  ;;  %v307_v20 = vsel %vm305_vm2, %v298_v18, 0  ;;  %v313_v21 = vsel %vm305_vm2, %v300_v19, 0 }
  0x8d   : > { %316 = vmatpush1.bf16.msra.mxu0 %v307_v20  ;;  %1498 = vmatpush3.bf16.msra.mxu1 %v313_v21 }
  0x8e   : > { %v399_v23 = vpop.permute.xlu1 %398  ;;  %v397_v24 = vpop.permute.xlu0 %396  ;;  %1503 = vmatprep.subr.bf16.mxu1 %v1588_v0 }
  0x8f   : > { %v405_v25 = vsel %vm404_vm4, %v397_v24, %v399_v23 }
  0x90   : > { %1441 = vmatmul.mubr.msk.bf16.vlgmr.msra.gmra.mrb[0].mxu0 %vm301_vm3, %v1435_v22  ;;  %1500 = vmatmul.mubr.msk.bf16.vlgmr.msra.gmra.mrb[0].mxu1 %vm301_vm3, %v1435_v22  ;;  %v412_v30 = vsel %vm305_vm2, %v405_v25, 0  ;;  %v1469_v22 = vld [vmem:[%s1810_s1 + $0x1c] sm:$0xf]  ;;  %v1473_v25 = vld [vmem:[%s1810_s1 + $0x20] sm:$0xf] }
  0x91   : > { %452 = vmatprep.mubr.bf16.mxu0 %v1589_v1  ;;  %1505 = vmatprep.mubr.msk.bf16.mxu1 %vm1590_vm0, %v1588_v0 }
  0x92   : > { %v403_v26 = vpop.permute.xlu1 %402  ;;  %v401_v27 = vpop.permute.xlu0 %400 }
  0x93   : > { %v406_v28 = vsel %vm404_vm4, %v399_v23, %v401_v27  ;;  %v407_v29 = vsel %vm404_vm4, %v401_v27, %v403_v26 }
  0x94   : > { %v418_v31 = vsel %vm305_vm2, %v407_v29, 0  ;;  %1443 = vmatprep.subr.msk.bf16.mxu0 %vm305_vm2, %v406_v28 }
  0x95   : > { %421 = vmatpush1.bf16.msra.mxu0 %v412_v30  ;;  %1504 = vmatpush3.bf16.msra.mxu1 %v418_v31 }
  0x96   : > { %v506_v33 = vpop.permute.xlu1 %505  ;;  %v504_v34 = vpop.permute.xlu0 %503  ;;  %1509 = vmatprep.subr.bf16.mxu1 %v1588_v0 }
  0x97   : > { %v512_v35 = vsel %vm511_vm5, %v504_v34, %v506_v33 }
  0x98   : > { %1444 = vmatmul.mubr.msk.bf16.vlgmr.msra.gmra.mrb[4].mxu0 %vm301_vm3, %v276_v32  ;;  %1506 = vmatmul.mubr.msk.bf16.vlgmr.msra.gmra.mrb[4].mxu1 %vm301_vm3, %v276_v32  ;;  %v519_v40 = vsel %vm305_vm2, %v512_v35, 0 }
  0x99   : > { %559 = vmatprep.mubr.bf16.mxu0 %v1589_v1  ;;  %1511 = vmatprep.mubr.msk.bf16.mxu1 %vm1590_vm0, %v1588_v0 }
  0x9a   : > { %v510_v36 = vpop.permute.xlu1 %509  ;;  %v508_v37 = vpop.permute.xlu0 %507 }
  0x9b   : > { %v513_v38 = vsel %vm511_vm5, %v506_v33, %v508_v37  ;;  %v514_v39 = vsel %vm511_vm5, %v508_v37, %v510_v36 }
  0x9c   : > { %v525_v41 = vsel %vm305_vm2, %v514_v39, 0  ;;  %1447 = vmatprep.subr.msk.bf16.mxu0 %vm305_vm2, %v513_v38 }
  0x9d   : > { %528 = vmatpush1.bf16.msra.mxu0 %v519_v40  ;;  %1510 = vmatpush3.bf16.msra.mxu1 %v525_v41 }
  0x9e   : > { %v616_v43 = vpop.permute.xlu1 %615  ;;  %v614_v44 = vpop.permute.xlu0 %613  ;;  %1515 = vmatprep.subr.bf16.mxu1 %v1588_v0 }
  0x9f   : > { %v622_v45 = vsel %vm621_vm6, %v614_v44, %v616_v43 }
  0xa0   : > { %1448 = vmatmul.mubr.msk.bf16.vlgmr.msra.gmra.mrb[8].mxu0 %vm301_vm3, %v1446_v42  ;;  %1512 = vmatmul.mubr.msk.bf16.vlgmr.msra.gmra.mrb[8].mxu1 %vm301_vm3, %v1446_v42  ;;  %v629_v50 = vsel %vm305_vm2, %v622_v45, 0 }
  0xa1   : > { %669 = vmatprep.mubr.bf16.mxu0 %v1589_v1  ;;  %1517 = vmatprep.mubr.msk.bf16.mxu1 %vm1590_vm0, %v1588_v0 }
  0xa2   : > { %v620_v46 = vpop.permute.xlu1 %619  ;;  %v618_v47 = vpop.permute.xlu0 %617 }
  0xa3   : > { %v623_v48 = vsel %vm621_vm6, %v616_v43, %v618_v47  ;;  %v624_v49 = vsel %vm621_vm6, %v618_v47, %v620_v46 }
  0xa4   : > { %v635_v51 = vsel %vm305_vm2, %v624_v49, 0  ;;  %1451 = vmatprep.subr.msk.bf16.mxu0 %vm305_vm2, %v623_v48 }
  0xa5   : > { %638 = vmatpush1.bf16.msra.mxu0 %v629_v50  ;;  %1516 = vmatpush3.bf16.msra.mxu1 %v635_v51 }
  0xa6   : > { %v832_v53 = vpop.permute.xlu0 %831  ;;  %1458 = vmatprep.subr.msk.bf16.mxu0 %vm305_vm2, %v1660_v10  ;;  %1521 = vmatprep.subr.bf16.mxu1 %v1588_v0  ;;  %v834_v56 = vpop.permute.xlu1 %833 }
  0xa7   : > { %v838_v59 = vsel %vm837_vm7, %v832_v53, %v834_v56 }
  0xa8   : > { %1452 = vmatmul.mubr.msk.bf16.vlgmr.msra.gmra.mrb[12].mxu0 %vm301_vm3, %v1450_v52  ;;  %1518 = vmatmul.mubr.msk.bf16.vlgmr.msra.gmra.mrb[12].mxu1 %vm301_vm3, %v1450_v52  ;;  %v844_v62 = vsel %vm305_vm2, %v838_v59, 0 }
  0xa9   : > { %746 = vmatpush1.bf16.msra.mxu0 %v737_v54  ;;  %1522 = vmatpush3.bf16.msra.mxu1 %v743_v55 }
  0xaa   : > { %v836_v57 = vpop.permute.xlu0 %835  ;;  %777 = vmatprep.mubr.bf16.mxu0 %v1589_v1  ;;  %1523 = vmatprep.mubr.msk.bf16.mxu1 %vm1590_vm0, %v1588_v0  ;;  %v939_v58 = vpop.permute.xlu1 %938 }
  0xab   : > { %v839_v60 = vsel %vm837_vm7, %v834_v56, %v836_v57  ;;  %1527 = vmatprep.subr.bf16.mxu1 %v1588_v0  ;;  %v850_v63 = vsel %vm305_vm2, %v836_v57, 0 }
  0xac   : > { %1462 = vmatprep.subr.msk.bf16.mxu0 %vm305_vm2, %v839_v60 }
  0xae   : > { %v943_v2 = vpop.permute.xlu1 %942  ;;  %v941_v3 = vpop.permute.xlu0 %940 }
  0xaf   : > { %v946_v4 = vsel %vm944_vm8, %v941_v3, %v943_v2  ;;  %v945_v7 = vsel %vm944_vm8, %v939_v58, %v941_v3  ;;  %v957_v9 = vsel %vm305_vm2, %v943_v2, 0 }
  0xb0   : > { %1459 = vmatmul.mubr.msk.bf16.vlgmr.msra.gmra.mrb[16].mxu0 %vm301_vm3, %v1454_v61  ;;  %1524 = vmatmul.mubr.msk.bf16.vlgmr.msra.gmra.mrb[16].mxu1 %vm301_vm3, %v1454_v61  ;;  %v951_v10 = vsel %vm305_vm2, %v945_v7, 0 }
  0xb1   : > { %853 = vmatpush1.bf16.msra.mxu0 %v844_v62  ;;  %1528 = vmatpush3.bf16.msra.mxu1 %v850_v63 }
  0xb2   : > { %884 = vmatprep.mubr.bf16.mxu0 %v1589_v1  ;;  %1529 = vmatprep.mubr.msk.bf16.mxu1 %vm1590_vm0, %v1588_v0  ;;  %v1046_v5 = vpop.permute.xlu0 %1045  ;;  %v1048_v6 = vpop.permute.xlu1 %1047 }
  0xb3   : > { %1466 = vmatprep.subr.msk.bf16.mxu0 %vm305_vm2, %v946_v4  ;;  %1533 = vmatprep.subr.bf16.mxu1 %v1588_v0  ;;  %v1052_v14 = vsel %vm1051_vm9, %v1046_v5, %v1048_v6 }
  0xb4   : > { %v1058_v18 = vsel %vm305_vm2, %v1052_v14, 0 }
  0xb6   : > { %v1050_v11 = vpop.permute.xlu0 %1049  ;;  %v1153_v12 = vpop.permute.xlu1 %1152 }
  0xb7   : > { %v1053_v13 = vsel %vm1051_vm9, %v1048_v6, %v1050_v11  ;;  %v1064_v19 = vsel %vm305_vm2, %v1050_v11, 0 }
  0xb8   : > { %1463 = vmatmul.mubr.msk.bf16.vlgmr.msra.gmra.mrb[20].mxu0 %vm301_vm3, %v1461_v8  ;;  %1530 = vmatmul.mubr.msk.bf16.vlgmr.msra.gmra.mrb[20].mxu1 %vm301_vm3, %v1461_v8 }
  0xb9   : > { %960 = vmatpush1.bf16.msra.mxu0 %v951_v10  ;;  %1534 = vmatpush3.bf16.msra.mxu1 %v957_v9 }
  0xba   : > { %991 = vmatprep.mubr.bf16.mxu0 %v1589_v1  ;;  %1535 = vmatprep.mubr.msk.bf16.mxu1 %vm1590_vm0, %v1588_v0  ;;  %v1157_v16 = vpop.permute.xlu1 %1156  ;;  %v1155_v17 = vpop.permute.xlu0 %1154 }
  0xbb   : > { %1470 = vmatprep.subr.msk.bf16.mxu0 %vm305_vm2, %v1053_v13  ;;  %1539 = vmatprep.subr.bf16.mxu1 %v1588_v0  ;;  %v1160_v20 = vsel %vm1158_vm10, %v1155_v17, %v1157_v16  ;;  %v1159_v21 = vsel %vm1158_vm10, %v1153_v12, %v1155_v17  ;;  %v1171_v23 = vsel %vm305_vm2, %v1157_v16, 0 }
  0xbc   : > { %v1165_v24 = vsel %vm305_vm2, %v1159_v21, 0 }
  0xc0   : > { %1467 = vmatmul.mubr.msk.bf16.vlgmr.msra.gmra.mrb[24].mxu0 %vm301_vm3, %v1465_v15  ;;  %1536 = vmatmul.mubr.msk.bf16.vlgmr.msra.gmra.mrb[24].mxu1 %vm301_vm3, %v1465_v15 }
  0xc1   : > { %1067 = vmatpush1.bf16.msra.mxu0 %v1058_v18  ;;  %1540 = vmatpush3.bf16.msra.mxu1 %v1064_v19 }
  0xc2   : > { %1098 = vmatprep.mubr.bf16.mxu0 %v1589_v1  ;;  %1541 = vmatprep.mubr.msk.bf16.mxu1 %vm1590_vm0, %v1588_v0 }
  0xc3   : > { %1474 = vmatprep.subr.msk.bf16.mxu0 %vm305_vm2, %v1160_v20  ;;  %1545 = vmatprep.subr.bf16.mxu1 %v1588_v0 }
  0xc8   : > { %1471 = vmatmul.mubr.msk.bf16.vlgmr.msra.gmra.mrb[28].mxu0 %vm301_vm3, %v1469_v22  ;;  %1542 = vmatmul.mubr.msk.bf16.vlgmr.msra.gmra.mrb[28].mxu1 %vm301_vm3, %v1469_v22 }
  0xc9   : > { %1174 = vmatpush1.bf16.msra.mxu0 %v1165_v24  ;;  %1546 = vmatpush3.bf16.msra.mxu1 %v1171_v23 }
  0xca   : > { %1205 = vmatprep.mubr.bf16.mxu0 %v1589_v1  ;;  %1547 = vmatprep.mubr.msk.bf16.mxu1 %vm1590_vm0, %v1588_v0 }
  0xd0   : > { %1475 = vmatmul.mubr.msk.bf16.vlgmr.msra.gmra.mrb[32].mxu0 %vm301_vm3, %v1473_v25  ;;  %1548 = vmatmul.mubr.msk.bf16.vlgmr.msra.gmra.mrb[32].mxu1 %vm301_vm3, %v1473_v25 }
 0x163   : > { %v349_v26 = vpop.f32.mrb[0].mxu0  ;;  %v390_v27 = vpop.f32.mrb[0].mxu1 }
 0x164   : > { %v351_v28 = vpop.f32.mrb[1].mxu0  ;;  %v1501_v29 = vpop.f32.mrb[1].mxu1 }
 0x165   : > { %v353_v30 = vpop.f32.mrb[2].mxu0  ;;  %v393_v31 = vpop.f32.mrb[2].mxu1 }
 0x166   : > { %v354_v32 = vpop.f32.mrb[3].mxu0  ;;  %v1502_v33 = vpop.f32.mrb[3].mxu1 }
 0x16b   : > { %v454_v1 = vpop.f32.mrb[4].mxu0  ;;  %v495_v34 = vpop.f32.mrb[4].mxu1 }
 0x16c   : > { %v455_v35 = vadd.f32 %v454_v1, %v349_v26  ;;  %v496_v0 = vadd.f32 %v495_v34, %v390_v27  ;;  %v456_v36 = vpop.f32.mrb[5].mxu0  ;;  %v1507_v37 = vpop.f32.mrb[5].mxu1 }
 0x16d   : > { %v457_v38 = vadd.f32 %v456_v36, %v351_v28  ;;  %v458_v39 = vpop.f32.mrb[6].mxu0  ;;  %v498_v40 = vpop.f32.mrb[6].mxu1 }
 0x16e   : > { %v459_v41 = vpop.f32.mrb[7].mxu0  ;;  %v1508_v42 = vpop.f32.mrb[7].mxu1 }
 0x173   : > { %v561_v43 = vpop.f32.mrb[8].mxu0  ;;  %v602_v44 = vpop.f32.mrb[8].mxu1 }
 0x174   : > { %v608_v45 = vadd.f32 %v561_v43, %v455_v35  ;;  %v610_v46 = vadd.f32 %v602_v44, %v496_v0  ;;  %v563_v47 = vpop.f32.mrb[9].mxu0  ;;  %v1513_v48 = vpop.f32.mrb[9].mxu1  ;;  %v1271_v35 = vlaneseq }
 0x175   : > { %v609_v49 = vadd.f32 %v563_v47, %v457_v38  ;;  %v565_v50 = vpop.f32.mrb[10].mxu0  ;;  %v605_v51 = vpop.f32.mrb[10].mxu1 }
 0x176   : > { %v566_v52 = vpop.f32.mrb[11].mxu0  ;;  %v1514_v53 = vpop.f32.mrb[11].mxu1 }
 0x177   : > { %v1269_v52 = vld [vmem:[%s1812_s3] sm:$0x7] }
 0x17b   : > { %v671_v54 = vpop.f32.mrb[12].mxu0  ;;  %v712_v55 = vpop.f32.mrb[12].mxu1 }
 0x17c   : > { %v718_v56 = vadd.f32 %v671_v54, %v608_v45  ;;  %v720_v57 = vadd.f32 %v712_v55, %v610_v46  ;;  %v673_v58 = vpop.f32.mrb[13].mxu0  ;;  %v1519_v59 = vpop.f32.mrb[13].mxu1  ;;  %v1272_v46 = vshrl.u32 %v1271_v35, 7 }
 0x17d   : > { %v719_v60 = vadd.f32 %v673_v58, %v609_v49  ;;  %v675_v61 = vpop.f32.mrb[14].mxu0  ;;  %v715_v62 = vpop.f32.mrb[14].mxu1 }
 0x17e   : > { %v676_v63 = vpop.f32.mrb[15].mxu0  ;;  %v1520_v2 = vpop.f32.mrb[15].mxu1  ;;  %v1273_v47 = vsub.s32 0, %v1272_v46  ;;  %v1281_v48 = vsub.s32 2, %v1272_v46  ;;  %v1277_v53 = vsub.s32 1, %v1272_v46 }
 0x17f   : > { %v1261_v49 = vpop.permute.xlu0 %1260 }
 0x180   : > { %v1274_v61 = vrot.slane %v1269_v52, %v1273_v47  ;;  %v1282_v62 = vrot.slane %v1269_v52, %v1281_v48 }
 0x183   : > { %v779_v3 = vpop.f32.mrb[16].mxu0  ;;  %v820_v4 = vpop.f32.mrb[16].mxu1 }
 0x184   : > { %v826_v5 = vadd.f32 %v779_v3, %v718_v56  ;;  %v828_v6 = vadd.f32 %v820_v4, %v720_v57  ;;  %v781_v7 = vpop.f32.mrb[17].mxu0  ;;  %v1525_v8 = vpop.f32.mrb[17].mxu1 }
 0x185   : > { %v827_v9 = vadd.f32 %v781_v7, %v719_v60  ;;  %v783_v10 = vpop.f32.mrb[18].mxu0  ;;  %v823_v11 = vpop.f32.mrb[18].mxu1 }
 0x186   : > { %v784_v12 = vpop.f32.mrb[19].mxu0  ;;  %v1526_v13 = vpop.f32.mrb[19].mxu1 }
 0x18b   : > { %v886_v14 = vpop.f32.mrb[20].mxu0  ;;  %v927_v15 = vpop.f32.mrb[20].mxu1 }
 0x18c   : > { %v933_v16 = vadd.f32 %v886_v14, %v826_v5  ;;  %v935_v17 = vadd.f32 %v927_v15, %v828_v6  ;;  %v888_v18 = vpop.f32.mrb[21].mxu0  ;;  %v1531_v19 = vpop.f32.mrb[21].mxu1  ;;  %v1278_v5 = vrot.slane %v1269_v52, %v1277_v53 }
 0x18d   : > { %v934_v20 = vadd.f32 %v888_v18, %v827_v9  ;;  %v890_v21 = vpop.f32.mrb[22].mxu0  ;;  %v930_v22 = vpop.f32.mrb[22].mxu1 }
 0x18e   : > { %v891_v23 = vpop.f32.mrb[23].mxu0  ;;  %v1532_v24 = vpop.f32.mrb[23].mxu1 }
 0x193   : > { %v993_v25 = vpop.f32.mrb[24].mxu0  ;;  %v1034_v26 = vpop.f32.mrb[24].mxu1 }
 0x194   : > { %v1040_v27 = vadd.f32 %v993_v25, %v933_v16  ;;  %v1042_v28 = vadd.f32 %v1034_v26, %v935_v17  ;;  %v995_v29 = vpop.f32.mrb[25].mxu0  ;;  %v1537_v30 = vpop.f32.mrb[25].mxu1 }
 0x195   : > { %v1041_v31 = vadd.f32 %v995_v29, %v934_v20  ;;  %v997_v32 = vpop.f32.mrb[26].mxu0  ;;  %v1037_v33 = vpop.f32.mrb[26].mxu1 }
 0x196   : > { %v998_v1 = vpop.f32.mrb[27].mxu0  ;;  %v1538_v34 = vpop.f32.mrb[27].mxu1 }
 0x19b   : > { %v1100_v0 = vpop.f32.mrb[28].mxu0  ;;  %v1141_v36 = vpop.f32.mrb[28].mxu1 }
 0x19c   : > { %v1147_v37 = vadd.f32 %v1100_v0, %v1040_v27  ;;  %v1149_v38 = vadd.f32 %v1141_v36, %v1042_v28  ;;  %v1102_v39 = vpop.f32.mrb[29].mxu0  ;;  %v1543_v40 = vpop.f32.mrb[29].mxu1 }
 0x19d   : > { %v1148_v41 = vadd.f32 %v1102_v39, %v1041_v31  ;;  %v1104_v42 = vpop.f32.mrb[30].mxu0  ;;  %v1144_v43 = vpop.f32.mrb[30].mxu1 }
 0x19e   : > { %v1105_v44 = vpop.f32.mrb[31].mxu0  ;;  %v1544_v45 = vpop.f32.mrb[31].mxu1 }
 0x1a3   : > { %v1207_v50 = vpop.f32.mrb[32].mxu0  ;;  %v1248_v51 = vpop.f32.mrb[32].mxu1 }
 0x1a4   : > { %v1254_v54 = vadd.f32 %v1207_v50, %v1147_v37  ;;  %v1256_v55 = vadd.f32 %v1248_v51, %v1149_v38  ;;  %v1209_v56 = vpop.f32.mrb[33].mxu0  ;;  %v1549_v57 = vpop.f32.mrb[33].mxu1 }
 0x1a5   : > { %v1255_v58 = vadd.f32 %v1209_v56, %v1148_v41  ;;  %v1211_v59 = vpop.f32.mrb[34].mxu0  ;;  %v1251_v60 = vpop.f32.mrb[34].mxu1 }
 0x1a6   : > { %v1263_v63 = vadd.f32 %v1261_v49, %v1254_v54  ;;  %v1265_v2 = vadd.f32 %v1261_v49, %v1256_v55  ;;  %v1212_v3 = vpop.f32.mrb[35].mxu0  ;;  %v1550_v4 = vpop.f32.mrb[35].mxu1 }
 0x1a7   : > { %v1264_v6 = vadd.f32 %v1261_v49, %v1255_v58 }
 0x1a8   : > { %v1266_v7 = vmax.f32 %v1263_v63, 0.0  ;;  %v1268_v8 = vmax.f32 %v1265_v2, 0.0 }
 0x1a9   : > { %v1267_v9 = vmax.f32 %v1264_v6, 0.0 }
 0x1aa   : > { %v1286_v10 = vmul.f32 %v1274_v61, %v1266_v7  ;;  %v1288_v11 = vmul.f32 %v1282_v62, %v1268_v8 }
 0x1ab   : > { %v1287_v12 = vmul.f32 %v1278_v5, %v1267_v9 }
 0x1ac   : > { %1292 = vst.msk [vmem:[%s264_s14 + $0x10] sm:$0xff] %vm1291_vm11, %v1288_v11  ;;  %1289 = vst [vmem:[%s264_s14] sm:$0xff] %v1286_v10  ;;  %v1300_v13 = vmul.f32 %v1286_v10, %v1286_v10  ;;  %v1302_v14 = vmul.f32 %v1288_v11, %v1288_v11  ;;  %v1294_v17 = vsel %vm1291_vm11, %v1288_v11, 0.0 }
 0x1ad   : > { %1290 = vst [vmem:[%s264_s14 + $0x8] sm:$0xff] %v1287_v12  ;;  %v1293_v15 = vadd.f32 %v1287_v12, %v1286_v10  ;;  %v1301_v16 = vmul.f32 %v1287_v12, %v1287_v12 }
 0x1ae   : > { %v1304_v20 = vsel %vm1291_vm11, %v1302_v14, 0.0 }
 0x1af   : > { %v1295_v18 = vadd.f32 %v1294_v17, %v1293_v15  ;;  %v1303_v19 = vadd.f32 %v1301_v16, %v1300_v13 }
 0x1b1   : > { %1296 = vadd.xlane.f32.xlu1 %v1295_v18  ;;  %v1305_v21 = vadd.f32 %v1304_v20, %v1303_v19 }
 0x1b3   : > { %1306 = vadd.xlane.f32.xlu0 %v1305_v21 }
 0x23e   : > { %v1297_v22 = vpop.xlane.xlu1 %1296 }
 0x23f   : > { %1299 = vst.msk [vmem:[%s268_s18] sm:$0xff] %vm621_vm6, %v1297_v22 }
 0x240   : > { %v1307_v23 = vpop.xlane.xlu0 %1306 }
 0x241   : > { %1308 = vst.msk [vmem:[%s272_s23] sm:$0xff] %vm621_vm6, %v1307_v23 }
 0x242 PF: > { %s17_s21 = sadd.s32 1, %s1586_s21  }
 0x243   : > { %p14_p4 = scmp.ge.s32.totalorder %s17_s21, 4  }
 0x245   :  { %16 = sbr.rel (!%p14_p4) target bundleno = 1 (0x1), region = 98 }

// kernel: _lambda_.9
= control target key start
LH: loop header
LB: loop body
LE: loop exit
PB: predicated region body
PF: predicated region fallthrough
CT: control target
= control target key end

     0   :  { %s1282_s12 = smov 0   ;;  %s1434_s0 = inlined_call_operand.vmem [shape: bf16[2,32,91], index: 0, kind: input, shape index: {}]   ;;  %s1435_s1 = inlined_call_operand.vmem [shape: bf16[16,8,8], index: 1, kind: input, shape index: {}]   ;;  %s1436_s2 = inlined_call_operand.vmem [shape: f32[8,1], index: 2, kind: input, shape index: {}]   ;;  %s1437_s3 = inlined_call_operand.vmem [shape: f32[2,8,81], index: 3, kind: output, shape index: {}]  }
   0x1 LB: > { %s1055_s13 = sadd.s32 4294967295, %s1254_s12   ;;  %p1059_p0 = scmp.ge.s32.totalorder %s1254_s12, 1  ;;  %s1254_s12 = sphi %s1282_s12, %s13_s12  }
   0x2   : > { %p137_p1 = scmp.lt.s32.totalorder %s1254_s12, 3 }
   0x4   : > { %p138_p2 = pnand %p1059_p0, %p137_p1 }
   0x5   : > { %p160_p3 = scmp.lt.s32.totalorder (!%p138_p2), %s1055_s13, 1  ;;  %v1256_v0 = vmov (!%p138_p2), 0.0   ;;  %vm1257_vm0 = vmmov (!%p138_p2), 0   ;;  %vm179_vm1 = vcmask (!%p138_p2), 1043456   ;;  %v1063_v8 = vld [vmem:[%s1435_s1 + $0x4] sm:$0xf] (!%p138_p2) }
   0x6   : > { %141 = sbr.rel (%p138_p2) target bundleno = 407 (0x197), region = 32  ;;  %1133 = vmatprep.subr.bf16.mxu0 (!%p138_p2), %v1256_v0  ;;  %1135 = vmatprep.mubr.msk.bf16.mxu0 (!%p138_p2), %vm1257_vm0, %v1256_v0  ;;  %vm175_vm2 = vcmask (!%p138_p2), 64512   ;;  %s1258_s20 = smov (!%p138_p2), 127   ;;  %v171_v12 = vld [vmem:[%s1435_s1] sm:$0xf] (!%p138_p2)  ;;  %v1261_v14 = vmov (!%p138_p2), 0  }
   0x7   : > { %1139 = vmatprep.subr.bf16.mxu1 (!%p138_p2), %v1256_v0  ;;  %1141 = vmatprep.mubr.msk.bf16.mxu1 (!%p138_p2), %vm1257_vm0, %v1256_v0  ;;  %s1259_s23 = smov (!%p138_p2), 119   ;;  %s1260_s24 = smov (!%p138_p2), 118   ;;  %v993_v13 = vld [vmem:[%s1436_s2] sm:$0xff] (!%p138_p2)  ;;  %v1066_v17 = vld [vmem:[%s1435_s1 + $0x8] sm:$0xf] (!%p138_p2)  ;;  %vm1000_vm3 = vcmask (!%p138_p2), 662528  }
   0x8   : > { %1243 = vset.pattern.permute.xlu0 (!%p138_p2), %v1261_v14  ;;  %v1069_v21 = vld [vmem:[%s1435_s1 + $0xc] sm:$0xf] (!%p138_p2)  ;;  %v1072_v24 = vld [vmem:[%s1435_s1 + $0x10] sm:$0xf] (!%p138_p2)  ;;  %v1074_v27 = vld [vmem:[%s1435_s1 + $0x14] sm:$0xf] (!%p138_p2) }
   0x9   : > { %v1076_v30 = vld [vmem:[%s1435_s1 + $0x18] sm:$0xf] (!%p138_p2)  ;;  %v1079_v33 = vld [vmem:[%s1435_s1 + $0x1c] sm:$0xf] (!%p138_p2)  ;;  %v1082_v36 = vld [vmem:[%s1435_s1 + $0x20] sm:$0xf] (!%p138_p2) }
   0xa   : > { %v1084_v39 = vld [vmem:[%s1435_s1 + $0x24] sm:$0xf] (!%p138_p2)  ;;  %v1086_v42 = vld [vmem:[%s1435_s1 + $0x28] sm:$0xf] (!%p138_p2)  ;;  %v1088_v45 = vld [vmem:[%s1435_s1 + $0x2c] sm:$0xf] (!%p138_p2) }
   0xb   : > { %v1090_v48 = vld [vmem:[%s1435_s1 + $0x30] sm:$0xf] (!%p138_p2)  ;;  %v1092_v51 = vld [vmem:[%s1435_s1 + $0x34] sm:$0xf] (!%p138_p2)  ;;  %v1094_v53 = vld [vmem:[%s1435_s1 + $0x38] sm:$0xf] (!%p138_p2) }
   0xc   : > { %v1096_v54 = vld [vmem:[%s1435_s1 + $0x3c] sm:$0xf] (!%p138_p2) }
   0xd   : > { %s1439_s13 = smov (!%p160_p3, %s1055_s13), 1 }
   0xe   : > { %s1100_s14 = sshll.u32 %s1439_s13, 4  ;;  %s1062_s30 = sshll.u32 %s1439_s13, 3 }
   0xf   : > { %s164_s17 = scalar_lea.vmem %s1434_s0, %s1100_s14  ;;  %s168_s6 = scalar_lea.vmem %s1437_s3, %s1062_s30 }
  0x10   : > { %v170_v1 = vld [vmem:[%s164_s17] sm:$0xf]  ;;  %v172_v2 = vld [vmem:[%s164_s17 + $0x4] sm:$0xf]  ;;  %v377_v3 = vld [vmem:[%s164_s17 + $0x8] sm:$0xf] }
  0x11   : > { %v1067_v4 = vcombine.low %v170_v1, %v170_v1  ;;  %v1077_v5 = vcombine.low %v377_v3, %v377_v3  ;;  %v427_v6 = vld [vmem:[%s164_s17 + $0xc] sm:$0xf]  ;;  %v181_v7 = vsel %vm179_vm1, %v172_v2, 0  ;;  %v227_v9 = vsel %vm179_vm1, %v170_v1, 0 }
  0x12   : > { %1134 = vmatpush3.bf16.msra.mxu0 %v181_v7  ;;  %v1070_v10 = vcombine.low %v172_v2, %v172_v2  ;;  %v1080_v11 = vcombine.low %v427_v6, %v427_v6  ;;  %1140 = vmatpush3.bf16.msra.mxu1 %v227_v9  ;;  %v384_v18 = vsel %vm179_vm1, %v377_v3, 0  ;;  %v434_v23 = vsel %vm179_vm1, %v427_v6, 0 }
  0x13   : > { %274 = vrot.lane.b32.xlu0 %v1067_v4, %s1258_s20  ;;  %482 = vrot.lane.b32.xlu1 %v1077_v5, %s1258_s20 }
  0x14   : > { %1145 = vmatprep.subr.bf16.mxu0 %v1256_v0  ;;  %1151 = vmatprep.subr.bf16.mxu1 %v1256_v0 }
  0x15   : > { %1136 = vmatmul.mubr.msk.bf16.vlgmr.msra.gmra.mrb[0].mxu0 %vm175_vm2, %v1063_v8  ;;  %1142 = vmatmul.mubr.msk.bf16.vlgmr.msra.gmra.mrb[0].mxu1 %vm175_vm2, %v171_v12 }
  0x16   : > { %1147 = vmatprep.mubr.msk.bf16.mxu0 %vm1257_vm0, %v1256_v0  ;;  %1153 = vmatprep.mubr.msk.bf16.mxu1 %vm1257_vm0, %v1256_v0 }
  0x17   : > { %328 = vrot.lane.b32.xlu0 %v1070_v10, %s1258_s20  ;;  %536 = vrot.lane.b32.xlu1 %v1080_v11, %s1258_s20 }
  0x1b   : > { %587 = vrot.lane.b32.xlu0 %v1067_v4, %s1259_s23  ;;  %638 = vrot.lane.b32.xlu1 %v1070_v10, %s1259_s23 }
  0x1f   : > { %689 = vrot.lane.b32.xlu0 %v1067_v4, %s1260_s24  ;;  %740 = vrot.lane.b32.xlu1 %v1070_v10, %s1260_s24 }
  0x23   : > { %791 = vrot.lane.b32.xlu0 %v1077_v5, %s1259_s23  ;;  %842 = vrot.lane.b32.xlu1 %v1080_v11, %s1259_s23 }
  0x27   : > { %893 = vrot.lane.b32.xlu0 %v1077_v5, %s1260_s24  ;;  %944 = vrot.lane.b32.xlu1 %v1080_v11, %s1260_s24 }
  0x2b   : > { %996 = vperm.xlu0 %1243, %v993_v13  }
  0x85   : > { %v275_v15 = vpop.permute.xlu0 %274  ;;  %v483_v22 = vpop.permute.xlu1 %482 }
  0x86   : > { %v280_v16 = vsel %vm179_vm1, %v275_v15, 0  ;;  %v488_v25 = vsel %vm179_vm1, %v483_v22, 0 }
  0x87   : > { %1146 = vmatpush3.bf16.msra.mxu0 %v280_v16 }
  0x88   : > { %1157 = vmatprep.subr.bf16.mxu0 %v1256_v0 }
  0x89   : > { %v329_v19 = vpop.permute.xlu0 %328  ;;  %v537_v26 = vpop.permute.xlu1 %536 }
  0x8a   : > { %v334_v20 = vsel %vm179_vm1, %v329_v19, 0  ;;  %1148 = vmatmul.mubr.msk.bf16.vlgmr.msra.gmra.mrb[4].mxu0 %vm175_vm2, %v1066_v17  ;;  %v542_v28 = vsel %vm179_vm1, %v537_v26, 0 }
  0x8b   : > { %1152 = vmatpush3.bf16.msra.mxu1 %v334_v20  ;;  %1158 = vmatpush3.bf16.msra.mxu0 %v384_v18 }
  0x8c   : > { %1159 = vmatprep.mubr.msk.bf16.mxu0 %vm1257_vm0, %v1256_v0  ;;  %1163 = vmatprep.subr.bf16.mxu1 %v1256_v0 }
  0x8d   : > { %1169 = vmatprep.subr.bf16.mxu0 %v1256_v0  ;;  %v588_v29 = vpop.permute.xlu0 %587  ;;  %v639_v32 = vpop.permute.xlu1 %638 }
  0x8e   : > { %1154 = vmatmul.mubr.msk.bf16.vlgmr.msra.gmra.mrb[4].mxu1 %vm175_vm2, %v1069_v21  ;;  %v593_v31 = vsel %vm179_vm1, %v588_v29, 0  ;;  %v644_v34 = vsel %vm179_vm1, %v639_v32, 0 }
  0x8f   : > { %1164 = vmatpush3.bf16.msra.mxu1 %v434_v23  ;;  %1165 = vmatprep.mubr.msk.bf16.mxu1 %vm1257_vm0, %v1256_v0 }
  0x90   : > { %1175 = vmatprep.subr.bf16.mxu1 %v1256_v0 }
  0x91   : > { %v690_v35 = vpop.permute.xlu0 %689  ;;  %v741_v38 = vpop.permute.xlu1 %740 }
  0x92   : > { %1160 = vmatmul.mubr.msk.bf16.vlgmr.msra.gmra.mrb[8].mxu0 %vm175_vm2, %v1072_v24  ;;  %v695_v37 = vsel %vm179_vm1, %v690_v35, 0  ;;  %v746_v40 = vsel %vm179_vm1, %v741_v38, 0 }
  0x93   : > { %1170 = vmatpush3.bf16.msra.mxu0 %v488_v25  ;;  %1171 = vmatprep.mubr.msk.bf16.mxu0 %vm1257_vm0, %v1256_v0 }
  0x94   : > { %1181 = vmatprep.subr.bf16.mxu0 %v1256_v0 }
  0x95   : > { %v792_v41 = vpop.permute.xlu0 %791  ;;  %v843_v44 = vpop.permute.xlu1 %842 }
  0x96   : > { %1166 = vmatmul.mubr.msk.bf16.vlgmr.msra.gmra.mrb[8].mxu1 %vm175_vm2, %v1074_v27  ;;  %v797_v43 = vsel %vm179_vm1, %v792_v41, 0  ;;  %v848_v46 = vsel %vm179_vm1, %v843_v44, 0 }
  0x97   : > { %1176 = vmatpush3.bf16.msra.mxu1 %v542_v28  ;;  %1177 = vmatprep.mubr.msk.bf16.mxu1 %vm1257_vm0, %v1256_v0 }
  0x98   : > { %1187 = vmatprep.subr.bf16.mxu1 %v1256_v0 }
  0x99   : > { %v894_v47 = vpop.permute.xlu0 %893  ;;  %v945_v50 = vpop.permute.xlu1 %944 }
  0x9a   : > { %1172 = vmatmul.mubr.msk.bf16.vlgmr.msra.gmra.mrb[12].mxu0 %vm175_vm2, %v1076_v30  ;;  %v899_v49 = vsel %vm179_vm1, %v894_v47, 0  ;;  %v950_v52 = vsel %vm179_vm1, %v945_v50, 0 }
  0x9b   : > { %1182 = vmatpush3.bf16.msra.mxu0 %v593_v31  ;;  %1183 = vmatprep.mubr.msk.bf16.mxu0 %vm1257_vm0, %v1256_v0 }
  0x9c   : > { %1193 = vmatprep.subr.bf16.mxu0 %v1256_v0 }
  0x9e   : > { %1178 = vmatmul.mubr.msk.bf16.vlgmr.msra.gmra.mrb[12].mxu1 %vm175_vm2, %v1079_v33 }
  0x9f   : > { %1188 = vmatpush3.bf16.msra.mxu1 %v644_v34  ;;  %1189 = vmatprep.mubr.msk.bf16.mxu1 %vm1257_vm0, %v1256_v0 }
  0xa0   : > { %1199 = vmatprep.subr.bf16.mxu1 %v1256_v0 }
  0xa2   : > { %1184 = vmatmul.mubr.msk.bf16.vlgmr.msra.gmra.mrb[16].mxu0 %vm175_vm2, %v1082_v36 }
  0xa3   : > { %1194 = vmatpush3.bf16.msra.mxu0 %v695_v37  ;;  %1195 = vmatprep.mubr.msk.bf16.mxu0 %vm1257_vm0, %v1256_v0 }
  0xa4   : > { %1205 = vmatprep.subr.bf16.mxu0 %v1256_v0 }
  0xa6   : > { %1190 = vmatmul.mubr.msk.bf16.vlgmr.msra.gmra.mrb[16].mxu1 %vm175_vm2, %v1084_v39 }
  0xa7   : > { %1200 = vmatpush3.bf16.msra.mxu1 %v746_v40  ;;  %1201 = vmatprep.mubr.msk.bf16.mxu1 %vm1257_vm0, %v1256_v0 }
  0xa8   : > { %1211 = vmatprep.subr.bf16.mxu1 %v1256_v0 }
  0xaa   : > { %1196 = vmatmul.mubr.msk.bf16.vlgmr.msra.gmra.mrb[20].mxu0 %vm175_vm2, %v1086_v42 }
  0xab   : > { %1206 = vmatpush3.bf16.msra.mxu0 %v797_v43  ;;  %1207 = vmatprep.mubr.msk.bf16.mxu0 %vm1257_vm0, %v1256_v0 }
  0xac   : > { %1217 = vmatprep.subr.bf16.mxu0 %v1256_v0 }
  0xae   : > { %1202 = vmatmul.mubr.msk.bf16.vlgmr.msra.gmra.mrb[20].mxu1 %vm175_vm2, %v1088_v45 }
  0xaf   : > { %1212 = vmatpush3.bf16.msra.mxu1 %v848_v46  ;;  %1213 = vmatprep.mubr.msk.bf16.mxu1 %vm1257_vm0, %v1256_v0 }
  0xb0   : > { %1223 = vmatprep.subr.bf16.mxu1 %v1256_v0 }
  0xb2   : > { %1208 = vmatmul.mubr.msk.bf16.vlgmr.msra.gmra.mrb[24].mxu0 %vm175_vm2, %v1090_v48 }
  0xb3   : > { %1218 = vmatpush3.bf16.msra.mxu0 %v899_v49  ;;  %1219 = vmatprep.mubr.msk.bf16.mxu0 %vm1257_vm0, %v1256_v0 }
  0xb6   : > { %1214 = vmatmul.mubr.msk.bf16.vlgmr.msra.gmra.mrb[24].mxu1 %vm175_vm2, %v1092_v51 }
  0xb7   : > { %1224 = vmatpush3.bf16.msra.mxu1 %v950_v52  ;;  %1225 = vmatprep.mubr.msk.bf16.mxu1 %vm1257_vm0, %v1256_v0 }
  0xba   : > { %1220 = vmatmul.mubr.msk.bf16.vlgmr.msra.gmra.mrb[28].mxu0 %vm175_vm2, %v1094_v53 }
  0xbe   : > { %1226 = vmatmul.mubr.msk.bf16.vlgmr.msra.gmra.mrb[28].mxu1 %vm175_vm2, %v1096_v54 }
  0xe8   : > { %v217_v55 = vpop.f32.mrb[0].mxu0  ;;  %v263_v58 = vpop.f32.mrb[0].mxu1 }
  0xe9   : > { %v1137_v56 = vpop.f32.mrb[1].mxu0  ;;  %v264_v60 = vadd.f32 %v263_v58, %v217_v55  ;;  %v1143_v61 = vpop.f32.mrb[1].mxu1 }
  0xea   : > { %v220_v57 = vpop.f32.mrb[2].mxu0  ;;  %v266_v62 = vpop.f32.mrb[2].mxu1 }
  0xeb   : > { %v1138_v59 = vpop.f32.mrb[3].mxu0  ;;  %v1144_v63 = vpop.f32.mrb[3].mxu1 }
 0x15d   : > { %v316_v1 = vpop.f32.mrb[4].mxu0 }
 0x15e   : > { %v322_v2 = vadd.f32 %v316_v1, %v264_v60  ;;  %v1149_v0 = vpop.f32.mrb[5].mxu0 }
 0x15f   : > { %v319_v3 = vpop.f32.mrb[6].mxu0  ;;  %v997_v0 = vpop.permute.xlu0 %996 }
 0x160   : > { %v1150_v4 = vpop.f32.mrb[7].mxu0 }
 0x161   : > { %v370_v5 = vpop.f32.mrb[4].mxu1 }
 0x162   : > { %v376_v6 = vadd.f32 %v370_v5, %v322_v2  ;;  %v1155_v7 = vpop.f32.mrb[5].mxu1 }
 0x163   : > { %v373_v8 = vpop.f32.mrb[6].mxu1 }
 0x164   : > { %v1156_v9 = vpop.f32.mrb[7].mxu1 }
 0x165   : > { %v420_v10 = vpop.f32.mrb[8].mxu0 }
 0x166   : > { %v426_v11 = vadd.f32 %v420_v10, %v376_v6  ;;  %v1161_v12 = vpop.f32.mrb[9].mxu0 }
 0x167   : > { %v423_v13 = vpop.f32.mrb[10].mxu0 }
 0x168   : > { %v1162_v14 = vpop.f32.mrb[11].mxu0 }
 0x169   : > { %v470_v15 = vpop.f32.mrb[8].mxu1 }
 0x16a   : > { %v476_v16 = vadd.f32 %v470_v15, %v426_v11  ;;  %v1167_v17 = vpop.f32.mrb[9].mxu1 }
 0x16b   : > { %v473_v18 = vpop.f32.mrb[10].mxu1 }
 0x16c   : > { %v1168_v19 = vpop.f32.mrb[11].mxu1 }
 0x16d   : > { %v524_v20 = vpop.f32.mrb[12].mxu0 }
 0x16e   : > { %v530_v21 = vadd.f32 %v524_v20, %v476_v16  ;;  %v1173_v22 = vpop.f32.mrb[13].mxu0 }
 0x16f   : > { %v527_v23 = vpop.f32.mrb[14].mxu0 }
 0x170   : > { %v1174_v24 = vpop.f32.mrb[15].mxu0 }
 0x171   : > { %v578_v25 = vpop.f32.mrb[12].mxu1 }
 0x172   : > { %v584_v26 = vadd.f32 %v578_v25, %v530_v21  ;;  %v1179_v27 = vpop.f32.mrb[13].mxu1 }
 0x173   : > { %v581_v28 = vpop.f32.mrb[14].mxu1 }
 0x174   : > { %v1180_v29 = vpop.f32.mrb[15].mxu1 }
 0x175   : > { %v629_v30 = vpop.f32.mrb[16].mxu0 }
 0x176   : > { %v635_v31 = vadd.f32 %v629_v30, %v584_v26  ;;  %v1185_v32 = vpop.f32.mrb[17].mxu0 }
 0x177   : > { %v632_v33 = vpop.f32.mrb[18].mxu0 }
 0x178   : > { %v1186_v34 = vpop.f32.mrb[19].mxu0 }
 0x179   : > { %v680_v35 = vpop.f32.mrb[16].mxu1 }
 0x17a   : > { %v686_v36 = vadd.f32 %v680_v35, %v635_v31  ;;  %v1191_v37 = vpop.f32.mrb[17].mxu1 }
 0x17b   : > { %v683_v38 = vpop.f32.mrb[18].mxu1 }
 0x17c   : > { %v1192_v39 = vpop.f32.mrb[19].mxu1 }
 0x17d   : > { %v731_v40 = vpop.f32.mrb[20].mxu0 }
 0x17e   : > { %v737_v41 = vadd.f32 %v731_v40, %v686_v36  ;;  %v1197_v42 = vpop.f32.mrb[21].mxu0 }
 0x17f   : > { %v734_v43 = vpop.f32.mrb[22].mxu0 }
 0x180   : > { %v1198_v44 = vpop.f32.mrb[23].mxu0 }
 0x181   : > { %v782_v45 = vpop.f32.mrb[20].mxu1 }
 0x182   : > { %v788_v46 = vadd.f32 %v782_v45, %v737_v41  ;;  %v1203_v47 = vpop.f32.mrb[21].mxu1 }
 0x183   : > { %v785_v48 = vpop.f32.mrb[22].mxu1 }
 0x184   : > { %v1204_v49 = vpop.f32.mrb[23].mxu1 }
 0x185   : > { %v833_v50 = vpop.f32.mrb[24].mxu0 }
 0x186   : > { %v839_v51 = vadd.f32 %v833_v50, %v788_v46  ;;  %v1209_v52 = vpop.f32.mrb[25].mxu0 }
 0x187   : > { %v836_v53 = vpop.f32.mrb[26].mxu0 }
 0x188   : > { %v1210_v54 = vpop.f32.mrb[27].mxu0 }
 0x189   : > { %v884_v55 = vpop.f32.mrb[24].mxu1 }
 0x18a   : > { %v890_v56 = vadd.f32 %v884_v55, %v839_v51  ;;  %v1215_v57 = vpop.f32.mrb[25].mxu1 }
 0x18b   : > { %v887_v58 = vpop.f32.mrb[26].mxu1 }
 0x18c   : > { %v1216_v59 = vpop.f32.mrb[27].mxu1 }
 0x18d   : > { %v935_v60 = vpop.f32.mrb[28].mxu0 }
 0x18e   : > { %v941_v61 = vadd.f32 %v935_v60, %v890_v56  ;;  %v1221_v62 = vpop.f32.mrb[29].mxu0 }
 0x18f   : > { %v938_v63 = vpop.f32.mrb[30].mxu0 }
 0x190   : > { %v1222_v1 = vpop.f32.mrb[31].mxu0 }
 0x191   : > { %v986_v2 = vpop.f32.mrb[28].mxu1 }
 0x192   : > { %v992_v3 = vadd.f32 %v986_v2, %v941_v61  ;;  %v1227_v4 = vpop.f32.mrb[29].mxu1 }
 0x193   : > { %v989_v5 = vpop.f32.mrb[30].mxu1 }
 0x194   : > { %v999_v6 = vadd.f32 %v997_v0, %v992_v3  ;;  %v1228_v7 = vpop.f32.mrb[31].mxu1 }
 0x196   : > { %1001 = vst.msk [vmem:[%s168_s6] sm:$0xff] %vm1000_vm3, %v999_v6 }
 0x197 PF: > { %s13_s12 = sadd.s32 1, %s1254_s12  }
 0x198   : > { %p10_p4 = scmp.ge.s32.totalorder %s13_s12, 4  }
 0x19a   :  { %12 = sbr.rel (!%p10_p4) target bundleno = 1 (0x1), region = 77 }

</bundles_post_ra>
